<compile_context>
chip_gen: v7x
topology: tpu7x:2x2x1
jax: 0.10.0
libtpu: 0.0.40
codegen_flags: <defaults>
</compile_context>

<pallas_src>
import numpy as np
import jax
import jax.numpy as jnp
from jax.experimental import pallas as pl
from jax.experimental.pallas import tpu as pltpu

# ---- small config (consistent with module, scaled down) ----
B = 4            # batch
P = 8            # object_proposals
DV = 16          # vote_dimension (per-proposal feature dim)
DO = 16          # ref object feature dim
ENC = DV + DO    # encoder_dim
E = 16           # embed_dim
A = 32           # attention_dim
H = 32           # decoder_dim
V = 16           # vocab_size
T = 6            # max caption length
N_CLOSEST = 4
OBJ_THRESH = 0.5


def _r8(x):
    return ((x + 7) // 8) * 8


# ---- packed weight slab: row offsets (all multiples of 8, static in-kernel slices) ----
R_WH = 0                      # [dec_att.T | f_beta.T | w_hh.T]   (H, A+DV+4H)
R_WINIT = _r8(R_WH + H)       # [init_h.T | init_c.T]             (ENC, 2H)
R_WEA = _r8(R_WINIT + ENC)    # enc_att.T                         (DV, A)
R_WOBJ = _r8(R_WEA + DV)      # w_ih rows acting on obj, .T       (DO, 4H)
R_WEMB = _r8(R_WOBJ + DO)     # w_ih rows acting on emb, .T       (E, 4H)
R_WAWE = _r8(R_WEMB + E)      # w_ih rows acting on awe, .T       (DV, 4H)
R_WFC = _r8(R_WAWE + DV)      # fc.T                              (H, V)
W_ROWS = _r8(R_WFC + H)
W_COLS = ((max(A + DV + 4 * H, 2 * H, A, 4 * H, V) + 127) // 128) * 128

# ---- packed bias/vector row: 128-lane slots ----
C_BATT = 0          # enc_att_b + dec_att_b   (A)
C_BFB = 128         # f_beta_b                (DV)
C_BG = 256          # b_ih + b_hh             (4H)
C_BFC = 384         # fc_b                    (V)
C_BINIT = 512       # [init_h_b | init_c_b]   (2H)
C_WFA = 640         # full_att_w              (A)
B_COLS = 768

# ---- packed misc data slab rows ----
M_EMB = 0                 # rows 0:T*B  : [emb (E) | active (1)]
M_MASK = _r8(T * B)       # rows _:_+B  : object mask (P)
M_OBJ = _r8(M_MASK + B)   # rows _:_+B  : obj features (DO)
M_ROWS = _r8(M_OBJ + B)
M_COLS = max(E + 1, DO, P)


# ======================= Pallas kernel =======================
def _decoder_kernel(misc_ref, agg_ref, w_ref, b_ref, preds_out, alphas_out):
    # ---- single loads of packed operands (static ref windows) ----
    agg = agg_ref[...]                                    # (B, P, DV)
    emb_flat = misc_ref[M_EMB:M_EMB + T * B, 0:E]         # (T*B, E)
    active = misc_ref[M_EMB:M_EMB + T * B, E:E + 1]       # (T*B, 1)
    maskf = misc_ref[M_MASK:M_MASK + B, 0:P]              # (B, P)
    obj = misc_ref[M_OBJ:M_OBJ + B, 0:DO]                 # (B, DO)

    w_h = w_ref[R_WH:R_WH + H, 0:A + DV + 4 * H]          # (H, A+DV+4H)
    w_init = w_ref[R_WINIT:R_WINIT + ENC, 0:2 * H]        # (ENC, 2H)
    w_ea = w_ref[R_WEA:R_WEA + DV, 0:A]                   # (DV, A)
    w_obj = w_ref[R_WOBJ:R_WOBJ + DO, 0:4 * H]            # (DO, 4H)
    w_emb = w_ref[R_WEMB:R_WEMB + E, 0:4 * H]             # (E, 4H)
    w_awe = w_ref[R_WAWE:R_WAWE + DV, 0:4 * H]            # (DV, 4H)
    w_fc = w_ref[R_WFC:R_WFC + H, 0:V]                    # (H, V)

    b_att = b_ref[:, C_BATT:C_BATT + A]                   # (1, A)
    b_fb = b_ref[:, C_BFB:C_BFB + DV]                     # (1, DV)
    b_gates = b_ref[:, C_BG:C_BG + 4 * H]                 # (1, 4H)
    b_fc = b_ref[:, C_BFC:C_BFC + V]                      # (1, V)
    b_init = b_ref[:, C_BINIT:C_BINIT + 2 * H]            # (1, 2H)
    w_fa = b_ref[:, C_WFA:C_WFA + A]                      # (1, A)

    # ---- time-invariant work, hoisted out of the decode loop ----
    # h0 / c0: one fused (ENC -> 2H) matmul
    mean_agg = jnp.mean(agg, axis=1)                                   # (B, DV)
    enc0 = jnp.concatenate([mean_agg, obj], axis=1)                    # (B, ENC)
    hc0 = (jnp.dot(enc0, w_init, preferred_element_type=jnp.float32)
           + b_init)                                                   # (B, 2H)
    h = hc0[:, :H]
    c = hc0[:, H:]

    # encoder-attention projection (enc_att_b + dec_att_b folded in), one-time
    att1 = (jnp.dot(agg.reshape(B * P, DV), w_ea,
                    preferred_element_type=jnp.float32).reshape(B, P, A)
            + b_att)                                                   # (B, P, A)

    # per-step LSTM-gate baseline: emb_t@W_emb + obj@W_obj + b_ih + b_hh, all hoisted
    obj_g = (jnp.dot(obj, w_obj, preferred_element_type=jnp.float32)
             + b_gates)                                                # (B, 4H)
    emb_g = jnp.dot(emb_flat, w_emb, preferred_element_type=jnp.float32)  # (T*B, 4H)
    base_g = emb_g.reshape(T, B, 4 * H) + obj_g[None, :, :]            # (T, B, 4H)

    # hoisted broadcasts (JAX does not CSE broadcast_in_dim inside the loop)
    w_fa_b = jnp.broadcast_to(w_fa.reshape(1, 1, A), (B, P, A))
    b_fb_b = jnp.broadcast_to(b_fb, (B, DV))

    maskb = maskf > 0.5                                                # (B, P)
    any_m = jnp.sum(maskf, axis=1, keepdims=True) > 0.5                # (B, 1)

    # Fully unrolled decode loop: T is small & static; two dependent MXU dots per
    # step (fused h-projection, awe gate contribution); everything else is
    # VPU/EUP/XLU work on single vregs.
    hs = []
    als = []
    for t in range(T):
        # fused h projection: attention query (A) | f_beta gate (DV) | hh gates (4H)
        d1 = jnp.dot(h, w_h, preferred_element_type=jnp.float32)      # (B, A+DV+4H)
        att2 = d1[:, :A]
        gate = jax.nn.sigmoid(d1[:, A:A + DV] + b_fb_b)               # (B, DV)
        hh_g = d1[:, A + DV:]                                         # (B, 4H)

        # masked softmax over proposals.  full_att bias omitted — softmax over the
        # masked entries is shift-invariant, so alpha is unchanged.
        e = jnp.maximum(att1 + att2[:, None, :], 0.0)                 # (B, P, A)
        att = jnp.sum(e * w_fa_b, axis=-1)                            # (B, P)
        att_m = jnp.where(maskb, att, -1e30)
        row_max = jnp.max(att_m, axis=1, keepdims=True)
        ex = jnp.where(maskb, jnp.exp(att_m - row_max), 0.0)
        denom = jnp.sum(ex, axis=1, keepdims=True)
        inv = pl.reciprocal(jnp.maximum(denom, 1e-30), approx=True)
        alpha = jnp.where(any_m, ex * inv, 0.0)                       # (B, P)

        awe = gate * jnp.sum(agg * alpha[:, :, None], axis=1)         # (B, DV)

        # LSTM gates: only the awe contribution is a mid-chain dot; emb/obj/bias
        # parts were hoisted, hh part rides on the fused h-projection above.
        gates = (jnp.dot(awe, w_awe, preferred_element_type=jnp.float32)
                 + hh_g + base_g[t])                                  # (B, 4H)
        i_g = jax.nn.sigmoid(gates[:, 0:H])
        f_g = jax.nn.sigmoid(gates[:, H:2 * H])
        g_g = jnp.tanh(gates[:, 2 * H:3 * H])
        o_g = jax.nn.sigmoid(gates[:, 3 * H:4 * H])
        c = f_g * c + i_g * g_g
        h = o_g * jnp.tanh(c)

        hs.append(h)
        als.append(alpha)

    # ---- post-loop: one batched vocab projection + single masked output writes ----
    h_all = jnp.concatenate(hs, axis=0)                               # (T*B, H)
    alpha_all = jnp.concatenate(als, axis=0)                          # (T*B, P)
    # TODO(synk): nn.Dropout(p=0.5) in training mode is stochastic; treated as identity here.
    preds = (jnp.dot(h_all, w_fc, preferred_element_type=jnp.float32)
             + b_fc)                                                  # (T*B, V)

    live = active > 0.5                                               # (T*B, 1)
    preds_out[...] = jnp.where(live, preds, 0.0)
    alphas_out[...] = jnp.where(live, alpha_all, 0.0)


def _pallas_decode(misc, agg, w_slab, b_row):
    operands = (misc, agg, w_slab, b_row)
    in_specs = [pl.BlockSpec(memory_space=pltpu.MemorySpace.VMEM) for _ in operands]
    out_specs = (pl.BlockSpec(memory_space=pltpu.MemorySpace.VMEM),
                 pl.BlockSpec(memory_space=pltpu.MemorySpace.VMEM))
    return pl.pallas_call(
        _decoder_kernel,
        out_shape=(jax.ShapeDtypeStruct((T * B, V), jnp.float32),
                   jax.ShapeDtypeStruct((T * B, P), jnp.float32)),
        in_specs=in_specs,
        out_specs=out_specs,
    )(*operands)


# ======================= parameters =======================
def make_params(key):
    ks = jax.random.split(key, 19)

    def u(k, shape, scale=0.1):
        return jax.random.uniform(k, shape, jnp.float32, -scale, scale)

    return dict(
        enc_att_w=u(ks[0], (A, DV)), enc_att_b=u(ks[1], (A,)),
        dec_att_w=u(ks[2], (A, H)), dec_att_b=u(ks[3], (A,)),
        full_att_w=u(ks[4], (1, A)), full_att_b=u(ks[5], (1,)),
        f_beta_w=u(ks[6], (DV, H)), f_beta_b=u(ks[7], (DV,)),
        fc_w=u(ks[8], (V, H)), fc_b=jnp.zeros((V,), jnp.float32),  # init_weights(): bias=0
        init_h_w=u(ks[9], (H, ENC)), init_h_b=u(ks[10], (H,)),
        init_c_w=u(ks[11], (H, ENC)), init_c_b=u(ks[12], (H,)),
        w_ih=u(ks[13], (4 * H, E + ENC)), w_hh=u(ks[14], (4 * H, H)),
        b_ih=u(ks[15], (4 * H,)), b_hh=u(ks[16], (4 * H,)),
        idx2embedding=u(ks[17], (V, E), 1.0),
        initial_embedding=u(ks[18], (E,), 1.0),
    )


def _pack_weights(p):
    """Pack all matmul weights into one slab + all biases/vectors into one row.

    In a real model this is done once at parameter-load time."""
    w_ih_t = p['w_ih'].T        # (E+ENC, 4H); row order acts on x = [emb | awe | obj]

    w = jnp.zeros((W_ROWS, W_COLS), jnp.float32)
    w = w.at[R_WH:R_WH + H, 0:A + DV + 4 * H].set(
        jnp.concatenate([p['dec_att_w'].T, p['f_beta_w'].T, p['w_hh'].T], axis=1))
    w = w.at[R_WINIT:R_WINIT + ENC, 0:2 * H].set(
        jnp.concatenate([p['init_h_w'].T, p['init_c_w'].T], axis=1))
    w = w.at[R_WEA:R_WEA + DV, 0:A].set(p['enc_att_w'].T)
    w = w.at[R_WOBJ:R_WOBJ + DO, 0:4 * H].set(w_ih_t[E + DV:])
    w = w.at[R_WEMB:R_WEMB + E, 0:4 * H].set(w_ih_t[:E])
    w = w.at[R_WAWE:R_WAWE + DV, 0:4 * H].set(w_ih_t[E:E + DV])
    w = w.at[R_WFC:R_WFC + H, 0:V].set(p['fc_w'].T)

    b = jnp.zeros((1, B_COLS), jnp.float32)
    b = b.at[0, C_BATT:C_BATT + A].set(p['enc_att_b'] + p['dec_att_b'])
    b = b.at[0, C_BFB:C_BFB + DV].set(p['f_beta_b'])
    b = b.at[0, C_BG:C_BG + 4 * H].set(p['b_ih'] + p['b_hh'])
    b = b.at[0, C_BFC:C_BFC + V].set(p['fc_b'])
    b = b.at[0, C_BINIT:C_BINIT + 2 * H].set(
        jnp.concatenate([p['init_h_b'], p['init_c_b']]))
    b = b.at[0, C_WFA:C_WFA + A].set(p['full_att_w'][0])
    return w, b


def _pack_misc(emb_tm, active_tb, mask_s, obj_s):
    """Pack embeddings, per-step active mask, object mask and obj features into one slab."""
    misc = jnp.zeros((M_ROWS, M_COLS), jnp.float32)
    misc = misc.at[M_EMB:M_EMB + T * B, 0:E].set(emb_tm.reshape(T * B, E))
    misc = misc.at[M_EMB:M_EMB + T * B, E].set(active_tb.reshape(T * B))
    misc = misc.at[M_MASK:M_MASK + B, 0:P].set(mask_s)
    misc = misc.at[M_OBJ:M_OBJ + B, 0:DO].set(obj_s)
    return misc


# ======================= forward (glue + kernel) =======================
def compute_object_mask(data):
    objectness = jax.nn.softmax(data['objectness_scores'], axis=-1)[:, :, -1]
    distance = jnp.linalg.norm(
        data['ref_center_label'][:, None, :] - data['aggregated_vote_xyz'], axis=2)
    object_mask = objectness > OBJ_THRESH
    distance = jnp.where(object_mask, distance, jnp.inf)
    smallest = -jax.lax.top_k(-distance, N_CLOSEST)[0]      # n_closest smallest
    max_distances = smallest[:, -1:]                        # n-th smallest (== torch max of topk)
    return object_mask & (distance <= max_distances)


def attentive_decoder_forward(params, data):
    agg = data['aggregated_vote_features']
    obj = data['ref_obj_features']
    cap = data['lang_indices']
    lengths = data['lang_len']

    object_mask = compute_object_mask(data)

    sort_ind = jnp.argsort(-lengths)         # descending, stable
    orig_idx = jnp.argsort(sort_ind)

    agg_s = agg[sort_ind]
    obj_s = obj[sort_ind]
    mask_s = object_mask[sort_ind].astype(jnp.float32)
    len_s = lengths[sort_ind].astype(jnp.int32)

    emb = params['idx2embedding'][cap][sort_ind]            # (B, T, E)
    init_e = jnp.broadcast_to(params['initial_embedding'][None, None, :], (B, 1, E))
    emb_full = jnp.concatenate([init_e, emb], axis=1)[:, :T, :]   # (B, T, E)
    emb_tm = jnp.transpose(emb_full, (1, 0, 2))             # (T, B, E)

    # active[t, b] == (sorted caption length b) > t  — reproduces torch batch_size_t exactly
    active_tb = (len_s[None, :] > jnp.arange(T, dtype=jnp.int32)[:, None]).astype(jnp.float32)

    w_slab, b_row = _pack_weights(params)
    misc = _pack_misc(emb_tm, active_tb, mask_s, obj_s)

    preds_flat, alphas_flat = _pallas_decode(misc, agg_s, w_slab, b_row)

    preds_tm = preds_flat.reshape(T, B, V)
    alphas_tm = alphas_flat.reshape(T, B, P)
    predictions = jnp.transpose(preds_tm, (1, 2, 0))[orig_idx]   # (B, V, T)
    alphas = jnp.transpose(alphas_tm, (1, 0, 2))[orig_idx]       # (B, T, P)
    return dict(caption_predictions=predictions, alphas=alphas, object_mask=object_mask)


# ======================= pure numpy reference (torch semantics) =======================
def _sigmoid(x):
    return 1.0 / (1.0 + np.exp(-x))


def reference_forward(params, data, omask):
    p = {k: np.asarray(v, np.float32) for k, v in params.items()}
    agg = np.asarray(data['aggregated_vote_features'])
    obj = np.asarray(data['ref_obj_features'])
    cap = np.asarray(data['lang_indices'])
    lengths = np.asarray(data['lang_len'])

    sort_ind = np.argsort(-lengths, kind='stable')
    orig_idx = np.argsort(sort_ind, kind='stable')
    agg_s, obj_s, mask_s, len_s = agg[sort_ind], obj[sort_ind], omask[sort_ind], lengths[sort_ind]

    emb = p['idx2embedding'][cap][sort_ind]
    emb_full = np.concatenate(
        [np.broadcast_to(p['initial_embedding'][None, None, :], (B, 1, E)), emb], axis=1)

    enc = np.concatenate([agg_s.mean(axis=1), obj_s], axis=1)
    h = enc @ p['init_h_w'].T + p['init_h_b']
    c = enc @ p['init_c_w'].T + p['init_c_b']

    predictions = np.zeros((B, V, T), np.float32)
    alphas = np.zeros((B, T, P), np.float32)
    decode_lengths = len_s.tolist()
    for t in range(max(decode_lengths)):
        bt = sum(1 for l in decode_lengths if l > t)
        agg_t, h_t, c_t = agg_s[:bt], h[:bt], c[:bt]
        att1 = agg_t @ p['enc_att_w'].T + p['enc_att_b']
        att2 = h_t @ p['dec_att_w'].T + p['dec_att_b']
        e = np.maximum(att1 + att2[:, None, :], 0.0)
        att = (e @ p['full_att_w'].T)[:, :, 0] + p['full_att_b'][0]
        alpha = np.zeros_like(att)
        for i in range(bt):
            m = mask_s[i]
            if m.any():
                v = att[i][m]
                ve = np.exp(v - v.max())
                alpha[i][m] = ve / ve.sum()
        awe = (agg_t * alpha[:, :, None]).sum(axis=1)
        gate = _sigmoid(h_t @ p['f_beta_w'].T + p['f_beta_b'])
        awe = gate * awe
        x = np.concatenate([emb_full[:bt, t, :], awe, obj_s[:bt]], axis=1)
        gates = x @ p['w_ih'].T + p['b_ih'] + h_t @ p['w_hh'].T + p['b_hh']
        i_g, f_g = _sigmoid(gates[:, :H]), _sigmoid(gates[:, H:2 * H])
        g_g, o_g = np.tanh(gates[:, 2 * H:3 * H]), _sigmoid(gates[:, 3 * H:])
        c = f_g * c_t + i_g * g_g
        h = o_g * np.tanh(c)
        predictions[:bt, :, t] = h @ p['fc_w'].T + p['fc_b']
        alphas[:bt, t, :] = alpha
    return predictions[orig_idx], alphas[orig_idx]


# ======================= main =======================
if __name__ == "__main__":
    key = jax.random.PRNGKey(0)
    kp, kd = jax.random.split(key)
    params = make_params(kp)
    ks = jax.random.split(kd, 7)
    data = dict(
        aggregated_vote_features=jax.random.normal(ks[0], (B, P, DV), jnp.float32),
        ref_obj_features=jax.random.normal(ks[1], (B, DO), jnp.float32),
        lang_indices=jax.random.randint(ks[2], (B, T), 0, V),
        lang_len=jax.random.randint(ks[3], (B,), 1, T + 1),
        objectness_scores=3.0 * jax.random.normal(ks[4], (B, P, 2), jnp.float32),
        ref_center_label=jax.random.normal(ks[5], (B, 3), jnp.float32),
        aggregated_vote_xyz=jax.random.normal(ks[6], (B, P, 3), jnp.float32),
    )

    out = attentive_decoder_forward(params, data)
    jax.block_until_ready(out)

    preds_ref, alphas_ref = reference_forward(params, data, np.asarray(out['object_mask']))
    assert np.allclose(np.asarray(out['caption_predictions']), preds_ref, atol=5e-3, rtol=5e-3), \
        "caption_predictions mismatch"
    assert np.allclose(np.asarray(out['alphas']), alphas_ref, atol=5e-3, rtol=5e-3), \
        "alphas mismatch"
    print("KERNEL_OK")
</pallas_src>

<mosaic_0001>
module attributes {stable_mosaic.version = 11 : i64} {
  func.func @_decoder_kernel(%arg0: memref<40x17xf32, #tpu.memory_space<vmem>>, %arg1: memref<4x8x16xf32, #tpu.memory_space<vmem>>, %arg2: memref<160x256xf32, #tpu.memory_space<vmem>>, %arg3: memref<1x768xf32, #tpu.memory_space<vmem>>, %arg4: memref<24x16xf32, #tpu.memory_space<vmem>>, %arg5: memref<24x8xf32, #tpu.memory_space<vmem>>) attributes {dimension_semantics = [], scalar_prefetch = 0 : i64, scratch_operands = 0 : i64, tpu.core_type = #tpu.core_type<tc>} {
    %c0 = arith.constant 0 : index
    %c0_0 = arith.constant 0 : index
    %c0_1 = arith.constant 0 : index
    %0 = vector.load %arg1[%c0, %c0_0, %c0_1] : memref<4x8x16xf32, #tpu.memory_space<vmem>>, vector<4x8x16xf32>
    %c0_2 = arith.constant 0 : index
    %c0_3 = arith.constant 0 : index
    %1 = vector.load %arg0[%c0_2, %c0_3] : memref<40x17xf32, #tpu.memory_space<vmem>>, vector<24x16xf32>
    %c0_4 = arith.constant 0 : index
    %c16 = arith.constant 16 : index
    %2 = vector.load %arg0[%c0_4, %c16] : memref<40x17xf32, #tpu.memory_space<vmem>>, vector<24x1xf32>
    %c24 = arith.constant 24 : index
    %c0_5 = arith.constant 0 : index
    %3 = vector.load %arg0[%c24, %c0_5] : memref<40x17xf32, #tpu.memory_space<vmem>>, vector<4x8xf32>
    %c32 = arith.constant 32 : index
    %c0_6 = arith.constant 0 : index
    %4 = vector.load %arg0[%c32, %c0_6] : memref<40x17xf32, #tpu.memory_space<vmem>>, vector<4x16xf32>
    %c0_7 = arith.constant 0 : index
    %c0_8 = arith.constant 0 : index
    %5 = vector.load %arg2[%c0_7, %c0_8] : memref<160x256xf32, #tpu.memory_space<vmem>>, vector<32x176xf32>
    %c32_9 = arith.constant 32 : index
    %c0_10 = arith.constant 0 : index
    %6 = vector.load %arg2[%c32_9, %c0_10] : memref<160x256xf32, #tpu.memory_space<vmem>>, vector<32x64xf32>
    %c64 = arith.constant 64 : index
    %c0_11 = arith.constant 0 : index
    %7 = vector.load %arg2[%c64, %c0_11] : memref<160x256xf32, #tpu.memory_space<vmem>>, vector<16x32xf32>
    %c80 = arith.constant 80 : index
    %c0_12 = arith.constant 0 : index
    %8 = vector.load %arg2[%c80, %c0_12] : memref<160x256xf32, #tpu.memory_space<vmem>>, vector<16x128xf32>
    %c96 = arith.constant 96 : index
    %c0_13 = arith.constant 0 : index
    %9 = vector.load %arg2[%c96, %c0_13] : memref<160x256xf32, #tpu.memory_space<vmem>>, vector<16x128xf32>
    %c112 = arith.constant 112 : index
    %c0_14 = arith.constant 0 : index
    %10 = vector.load %arg2[%c112, %c0_14] : memref<160x256xf32, #tpu.memory_space<vmem>>, vector<16x128xf32>
    %c128 = arith.constant 128 : index
    %c0_15 = arith.constant 0 : index
    %11 = vector.load %arg2[%c128, %c0_15] : memref<160x256xf32, #tpu.memory_space<vmem>>, vector<32x16xf32>
    %c0_16 = arith.constant 0 : index
    %c0_17 = arith.constant 0 : index
    %12 = vector.load %arg3[%c0_16, %c0_17] : memref<1x768xf32, #tpu.memory_space<vmem>>, vector<1x32xf32>
    %c0_18 = arith.constant 0 : index
    %c128_19 = arith.constant 128 : index
    %13 = vector.load %arg3[%c0_18, %c128_19] : memref<1x768xf32, #tpu.memory_space<vmem>>, vector<1x16xf32>
    %c0_20 = arith.constant 0 : index
    %c256 = arith.constant 256 : index
    %14 = vector.load %arg3[%c0_20, %c256] : memref<1x768xf32, #tpu.memory_space<vmem>>, vector<1x128xf32>
    %c0_21 = arith.constant 0 : index
    %c384 = arith.constant 384 : index
    %15 = vector.load %arg3[%c0_21, %c384] : memref<1x768xf32, #tpu.memory_space<vmem>>, vector<1x16xf32>
    %c0_22 = arith.constant 0 : index
    %c512 = arith.constant 512 : index
    %16 = vector.load %arg3[%c0_22, %c512] : memref<1x768xf32, #tpu.memory_space<vmem>>, vector<1x64xf32>
    %c0_23 = arith.constant 0 : index
    %c640 = arith.constant 640 : index
    %17 = vector.load %arg3[%c0_23, %c640] : memref<1x768xf32, #tpu.memory_space<vmem>>, vector<1x32xf32>
    %cst = arith.constant dense<0.000000e+00> : vector<4x16xf32>
    %18 = vector.multi_reduction <add>, %0, %cst [1] : vector<4x8x16xf32> to vector<4x16xf32>
    %cst_24 = arith.constant 8.000000e+00 : f32
    %19 = vector.broadcast %cst_24 : f32 to vector<4x16xf32>
    %20 = arith.divf %18, %19 : vector<4x16xf32>
    %21 = tpu.concatenate %20, %4 in 1 : vector<4x16xf32>, vector<4x16xf32> -> vector<4x32xf32>
    %cst_25 = arith.constant dense<0.000000e+00> : vector<4x64xf32>
    %22 = tpu.matmul %21, %6, %cst_25 {dimension_numbers = #tpu.dot_dimension_numbers<[1], [0], [0], [1], [0, 0, 1, 1], [], []>} : vector<4x32xf32>, vector<32x64xf32>, vector<4x64xf32> -> vector<4x64xf32>
    %23 = vector.broadcast %16 : vector<1x64xf32> to vector<4x64xf32>
    %24 = arith.addf %22, %23 : vector<4x64xf32>
    %25 = vector.extract_strided_slice %24 {offsets = [0, 0], sizes = [4, 32], strides = [1, 1]} : vector<4x64xf32> to vector<4x32xf32>
    %26 = vector.extract_strided_slice %24 {offsets = [0, 32], sizes = [4, 32], strides = [1, 1]} : vector<4x64xf32> to vector<4x32xf32>
    %27 = vector.shape_cast %0 : vector<4x8x16xf32> to vector<32x16xf32>
    %cst_26 = arith.constant dense<0.000000e+00> : vector<32x32xf32>
    %28 = tpu.matmul %27, %7, %cst_26 {dimension_numbers = #tpu.dot_dimension_numbers<[1], [0], [0], [1], [0, 0, 1, 1], [], []>} : vector<32x16xf32>, vector<16x32xf32>, vector<32x32xf32> -> vector<32x32xf32>
    %29 = vector.shape_cast %28 : vector<32x32xf32> to vector<4x8x32xf32>
    %30 = vector.shape_cast %12 : vector<1x32xf32> to vector<1x1x32xf32>
    %31 = vector.broadcast %30 : vector<1x1x32xf32> to vector<4x8x32xf32>
    %32 = arith.addf %29, %31 : vector<4x8x32xf32>
    %cst_27 = arith.constant dense<0.000000e+00> : vector<4x128xf32>
    %33 = tpu.matmul %4, %8, %cst_27 {dimension_numbers = #tpu.dot_dimension_numbers<[1], [0], [0], [1], [0, 0, 1, 1], [], []>} : vector<4x16xf32>, vector<16x128xf32>, vector<4x128xf32> -> vector<4x128xf32>
    %34 = vector.broadcast %14 : vector<1x128xf32> to vector<4x128xf32>
    %35 = arith.addf %33, %34 : vector<4x128xf32>
    %cst_28 = arith.constant dense<0.000000e+00> : vector<24x128xf32>
    %36 = tpu.matmul %1, %9, %cst_28 {dimension_numbers = #tpu.dot_dimension_numbers<[1], [0], [0], [1], [0, 0, 1, 1], [], []>} : vector<24x16xf32>, vector<16x128xf32>, vector<24x128xf32> -> vector<24x128xf32>
    %37 = vector.shape_cast %36 : vector<24x128xf32> to vector<6x4x128xf32>
    %38 = vector.shape_cast %35 : vector<4x128xf32> to vector<1x4x128xf32>
    %39 = vector.broadcast %38 : vector<1x4x128xf32> to vector<6x4x128xf32>
    %40 = arith.addf %37, %39 : vector<6x4x128xf32>
    %41 = vector.shape_cast %17 : vector<1x32xf32> to vector<1x1x32xf32>
    %42 = vector.shape_cast %41 : vector<1x1x32xf32> to vector<1x1x32xf32>
    %43 = vector.broadcast %42 : vector<1x1x32xf32> to vector<4x8x32xf32>
    %44 = vector.shape_cast %13 : vector<1x16xf32> to vector<1x16xf32>
    %45 = vector.broadcast %44 : vector<1x16xf32> to vector<4x16xf32>
    %cst_29 = arith.constant 5.000000e-01 : f32
    %46 = vector.broadcast %cst_29 : f32 to vector<4x8xf32>
    %47 = arith.cmpf ogt, %3, %46 : vector<4x8xf32>
    %cst_30 = arith.constant dense<0.000000e+00> : vector<4xf32>
    %48 = vector.multi_reduction <add>, %3, %cst_30 [1] : vector<4x8xf32> to vector<4xf32>
    %49 = vector.shape_cast %48 : vector<4xf32> to vector<4x1xf32>
    %cst_31 = arith.constant 5.000000e-01 : f32
    %50 = vector.broadcast %cst_31 : f32 to vector<4x1xf32>
    %51 = arith.cmpf ogt, %49, %50 : vector<4x1xf32>
    %cst_32 = arith.constant dense<0.000000e+00> : vector<4x176xf32>
    %52 = tpu.matmul %25, %5, %cst_32 {dimension_numbers = #tpu.dot_dimension_numbers<[1], [0], [0], [1], [0, 0, 1, 1], [], []>} : vector<4x32xf32>, vector<32x176xf32>, vector<4x176xf32> -> vector<4x176xf32>
    %53 = vector.extract_strided_slice %52 {offsets = [0, 0], sizes = [4, 32], strides = [1, 1]} : vector<4x176xf32> to vector<4x32xf32>
    %54 = vector.extract_strided_slice %52 {offsets = [0, 32], sizes = [4, 16], strides = [1, 1]} : vector<4x176xf32> to vector<4x16xf32>
    %55 = arith.addf %54, %45 : vector<4x16xf32>
    %56 = arith.negf %55 : vector<4x16xf32>
    %57 = math.exp %56 : vector<4x16xf32>
    %cst_33 = arith.constant 1.000000e+00 : f32
    %58 = vector.broadcast %cst_33 : f32 to vector<4x16xf32>
    %59 = arith.addf %58, %57 : vector<4x16xf32>
    %60 = arith.divf %58, %59 : vector<4x16xf32>
    %61 = vector.extract_strided_slice %52 {offsets = [0, 48], sizes = [4, 128], strides = [1, 1]} : vector<4x176xf32> to vector<4x128xf32>
    %62 = vector.shape_cast %53 : vector<4x32xf32> to vector<4x1x32xf32>
    %63 = vector.broadcast %62 : vector<4x1x32xf32> to vector<4x8x32xf32>
    %64 = arith.addf %32, %63 : vector<4x8x32xf32>
    %cst_34 = arith.constant 0.000000e+00 : f32
    %65 = vector.broadcast %cst_34 : f32 to vector<4x8x32xf32>
    %66 = arith.maximumf %64, %65 : vector<4x8x32xf32>
    %67 = arith.mulf %66, %43 : vector<4x8x32xf32>
    %cst_35 = arith.constant dense<0.000000e+00> : vector<4x8xf32>
    %68 = vector.multi_reduction <add>, %67, %cst_35 [2] : vector<4x8x32xf32> to vector<4x8xf32>
    %cst_36 = arith.constant -1.000000e+30 : f32
    %69 = vector.broadcast %cst_36 : f32 to vector<4x8xf32>
    %70 = arith.select %47, %68, %69 : vector<4x8xi1>, vector<4x8xf32>
    %cst_37 = arith.constant dense<0xFF800000> : vector<4xf32>
    %71 = vector.multi_reduction <maximumf>, %70, %cst_37 [1] : vector<4x8xf32> to vector<4xf32>
    %72 = vector.shape_cast %71 : vector<4xf32> to vector<4x1xf32>
    %73 = vector.broadcast %72 : vector<4x1xf32> to vector<4x8xf32>
    %74 = arith.subf %70, %73 : vector<4x8xf32>
    %75 = math.exp %74 : vector<4x8xf32>
    %cst_38 = arith.constant 0.000000e+00 : f32
    %76 = vector.broadcast %cst_38 : f32 to vector<4x8xf32>
    %77 = arith.select %47, %75, %76 : vector<4x8xi1>, vector<4x8xf32>
    %cst_39 = arith.constant dense<0.000000e+00> : vector<4xf32>
    %78 = vector.multi_reduction <add>, %77, %cst_39 [1] : vector<4x8xf32> to vector<4xf32>
    %79 = vector.shape_cast %78 : vector<4xf32> to vector<4x1xf32>
    %cst_40 = arith.constant 1.000000e-30 : f32
    %80 = vector.broadcast %cst_40 : f32 to vector<4x1xf32>
    %81 = arith.maximumf %79, %80 : vector<4x1xf32>
    %82 = tpu.reciprocal %81 {approx = true} : vector<4x1xf32> -> vector<4x1xf32>
    %83 = vector.broadcast %82 : vector<4x1xf32> to vector<4x8xf32>
    %84 = arith.mulf %77, %83 : vector<4x8xf32>
    %cst_41 = arith.constant 0.000000e+00 : f32
    %85 = vector.shape_cast %51 : vector<4x1xi1> to vector<4x1xi1>
    %86 = vector.broadcast %85 : vector<4x1xi1> to vector<4x8xi1>
    %87 = vector.broadcast %cst_41 : f32 to vector<4x8xf32>
    %88 = arith.select %86, %84, %87 : vector<4x8xi1>, vector<4x8xf32>
    %89 = vector.shape_cast %88 : vector<4x8xf32> to vector<4x8x1xf32>
    %90 = vector.broadcast %89 : vector<4x8x1xf32> to vector<4x8x16xf32>
    %91 = arith.mulf %0, %90 : vector<4x8x16xf32>
    %cst_42 = arith.constant dense<0.000000e+00> : vector<4x16xf32>
    %92 = vector.multi_reduction <add>, %91, %cst_42 [1] : vector<4x8x16xf32> to vector<4x16xf32>
    %93 = arith.mulf %60, %92 : vector<4x16xf32>
    %cst_43 = arith.constant dense<0.000000e+00> : vector<4x128xf32>
    %94 = tpu.matmul %93, %10, %cst_43 {dimension_numbers = #tpu.dot_dimension_numbers<[1], [0], [0], [1], [0, 0, 1, 1], [], []>} : vector<4x16xf32>, vector<16x128xf32>, vector<4x128xf32> -> vector<4x128xf32>
    %95 = arith.addf %94, %61 : vector<4x128xf32>
    %96 = vector.extract_strided_slice %40 {offsets = [0, 0, 0], sizes = [1, 4, 128], strides = [1, 1, 1]} : vector<6x4x128xf32> to vector<1x4x128xf32>
    %97 = vector.shape_cast %96 : vector<1x4x128xf32> to vector<4x128xf32>
    %98 = arith.addf %95, %97 : vector<4x128xf32>
    %99 = vector.extract_strided_slice %98 {offsets = [0, 0], sizes = [4, 32], strides = [1, 1]} : vector<4x128xf32> to vector<4x32xf32>
    %100 = arith.negf %99 : vector<4x32xf32>
    %101 = math.exp %100 : vector<4x32xf32>
    %cst_44 = arith.constant 1.000000e+00 : f32
    %102 = vector.broadcast %cst_44 : f32 to vector<4x32xf32>
    %103 = arith.addf %102, %101 : vector<4x32xf32>
    %104 = arith.divf %102, %103 : vector<4x32xf32>
    %105 = vector.extract_strided_slice %98 {offsets = [0, 32], sizes = [4, 32], strides = [1, 1]} : vector<4x128xf32> to vector<4x32xf32>
    %106 = arith.negf %105 : vector<4x32xf32>
    %107 = math.exp %106 : vector<4x32xf32>
    %cst_45 = arith.constant 1.000000e+00 : f32
    %108 = vector.broadcast %cst_45 : f32 to vector<4x32xf32>
    %109 = arith.addf %108, %107 : vector<4x32xf32>
    %110 = arith.divf %108, %109 : vector<4x32xf32>
    %111 = vector.extract_strided_slice %98 {offsets = [0, 64], sizes = [4, 32], strides = [1, 1]} : vector<4x128xf32> to vector<4x32xf32>
    %112 = math.tanh %111 : vector<4x32xf32>
    %113 = vector.extract_strided_slice %98 {offsets = [0, 96], sizes = [4, 32], strides = [1, 1]} : vector<4x128xf32> to vector<4x32xf32>
    %114 = arith.negf %113 : vector<4x32xf32>
    %115 = math.exp %114 : vector<4x32xf32>
    %cst_46 = arith.constant 1.000000e+00 : f32
    %116 = vector.broadcast %cst_46 : f32 to vector<4x32xf32>
    %117 = arith.addf %116, %115 : vector<4x32xf32>
    %118 = arith.divf %116, %117 : vector<4x32xf32>
    %119 = arith.mulf %110, %26 : vector<4x32xf32>
    %120 = arith.mulf %104, %112 : vector<4x32xf32>
    %121 = arith.addf %119, %120 : vector<4x32xf32>
    %122 = math.tanh %121 : vector<4x32xf32>
    %123 = arith.mulf %118, %122 : vector<4x32xf32>
    %cst_47 = arith.constant dense<0.000000e+00> : vector<4x176xf32>
    %124 = tpu.matmul %123, %5, %cst_47 {dimension_numbers = #tpu.dot_dimension_numbers<[1], [0], [0], [1], [0, 0, 1, 1], [], []>} : vector<4x32xf32>, vector<32x176xf32>, vector<4x176xf32> -> vector<4x176xf32>
    %125 = vector.extract_strided_slice %124 {offsets = [0, 0], sizes = [4, 32], strides = [1, 1]} : vector<4x176xf32> to vector<4x32xf32>
    %126 = vector.extract_strided_slice %124 {offsets = [0, 32], sizes = [4, 16], strides = [1, 1]} : vector<4x176xf32> to vector<4x16xf32>
    %127 = arith.addf %126, %45 : vector<4x16xf32>
    %128 = arith.negf %127 : vector<4x16xf32>
    %129 = math.exp %128 : vector<4x16xf32>
    %cst_48 = arith.constant 1.000000e+00 : f32
    %130 = vector.broadcast %cst_48 : f32 to vector<4x16xf32>
    %131 = arith.addf %130, %129 : vector<4x16xf32>
    %132 = arith.divf %130, %131 : vector<4x16xf32>
    %133 = vector.extract_strided_slice %124 {offsets = [0, 48], sizes = [4, 128], strides = [1, 1]} : vector<4x176xf32> to vector<4x128xf32>
    %134 = vector.shape_cast %125 : vector<4x32xf32> to vector<4x1x32xf32>
    %135 = vector.broadcast %134 : vector<4x1x32xf32> to vector<4x8x32xf32>
    %136 = arith.addf %32, %135 : vector<4x8x32xf32>
    %cst_49 = arith.constant 0.000000e+00 : f32
    %137 = vector.broadcast %cst_49 : f32 to vector<4x8x32xf32>
    %138 = arith.maximumf %136, %137 : vector<4x8x32xf32>
    %139 = arith.mulf %138, %43 : vector<4x8x32xf32>
    %cst_50 = arith.constant dense<0.000000e+00> : vector<4x8xf32>
    %140 = vector.multi_reduction <add>, %139, %cst_50 [2] : vector<4x8x32xf32> to vector<4x8xf32>
    %cst_51 = arith.constant -1.000000e+30 : f32
    %141 = vector.broadcast %cst_51 : f32 to vector<4x8xf32>
    %142 = arith.select %47, %140, %141 : vector<4x8xi1>, vector<4x8xf32>
    %cst_52 = arith.constant dense<0xFF800000> : vector<4xf32>
    %143 = vector.multi_reduction <maximumf>, %142, %cst_52 [1] : vector<4x8xf32> to vector<4xf32>
    %144 = vector.shape_cast %143 : vector<4xf32> to vector<4x1xf32>
    %145 = vector.broadcast %144 : vector<4x1xf32> to vector<4x8xf32>
    %146 = arith.subf %142, %145 : vector<4x8xf32>
    %147 = math.exp %146 : vector<4x8xf32>
    %cst_53 = arith.constant 0.000000e+00 : f32
    %148 = vector.broadcast %cst_53 : f32 to vector<4x8xf32>
    %149 = arith.select %47, %147, %148 : vector<4x8xi1>, vector<4x8xf32>
    %cst_54 = arith.constant dense<0.000000e+00> : vector<4xf32>
    %150 = vector.multi_reduction <add>, %149, %cst_54 [1] : vector<4x8xf32> to vector<4xf32>
    %151 = vector.shape_cast %150 : vector<4xf32> to vector<4x1xf32>
    %cst_55 = arith.constant 1.000000e-30 : f32
    %152 = vector.broadcast %cst_55 : f32 to vector<4x1xf32>
    %153 = arith.maximumf %151, %152 : vector<4x1xf32>
    %154 = tpu.reciprocal %153 {approx = true} : vector<4x1xf32> -> vector<4x1xf32>
    %155 = vector.broadcast %154 : vector<4x1xf32> to vector<4x8xf32>
    %156 = arith.mulf %149, %155 : vector<4x8xf32>
    %cst_56 = arith.constant 0.000000e+00 : f32
    %157 = vector.shape_cast %51 : vector<4x1xi1> to vector<4x1xi1>
    %158 = vector.broadcast %157 : vector<4x1xi1> to vector<4x8xi1>
    %159 = vector.broadcast %cst_56 : f32 to vector<4x8xf32>
    %160 = arith.select %158, %156, %159 : vector<4x8xi1>, vector<4x8xf32>
    %161 = vector.shape_cast %160 : vector<4x8xf32> to vector<4x8x1xf32>
    %162 = vector.broadcast %161 : vector<4x8x1xf32> to vector<4x8x16xf32>
    %163 = arith.mulf %0, %162 : vector<4x8x16xf32>
    %cst_57 = arith.constant dense<0.000000e+00> : vector<4x16xf32>
    %164 = vector.multi_reduction <add>, %163, %cst_57 [1] : vector<4x8x16xf32> to vector<4x16xf32>
    %165 = arith.mulf %132, %164 : vector<4x16xf32>
    %cst_58 = arith.constant dense<0.000000e+00> : vector<4x128xf32>
    %166 = tpu.matmul %165, %10, %cst_58 {dimension_numbers = #tpu.dot_dimension_numbers<[1], [0], [0], [1], [0, 0, 1, 1], [], []>} : vector<4x16xf32>, vector<16x128xf32>, vector<4x128xf32> -> vector<4x128xf32>
    %167 = arith.addf %166, %133 : vector<4x128xf32>
    %168 = vector.extract_strided_slice %40 {offsets = [1, 0, 0], sizes = [1, 4, 128], strides = [1, 1, 1]} : vector<6x4x128xf32> to vector<1x4x128xf32>
    %169 = vector.shape_cast %168 : vector<1x4x128xf32> to vector<4x128xf32>
    %170 = arith.addf %167, %169 : vector<4x128xf32>
    %171 = vector.extract_strided_slice %170 {offsets = [0, 0], sizes = [4, 32], strides = [1, 1]} : vector<4x128xf32> to vector<4x32xf32>
    %172 = arith.negf %171 : vector<4x32xf32>
    %173 = math.exp %172 : vector<4x32xf32>
    %cst_59 = arith.constant 1.000000e+00 : f32
    %174 = vector.broadcast %cst_59 : f32 to vector<4x32xf32>
    %175 = arith.addf %174, %173 : vector<4x32xf32>
    %176 = arith.divf %174, %175 : vector<4x32xf32>
    %177 = vector.extract_strided_slice %170 {offsets = [0, 32], sizes = [4, 32], strides = [1, 1]} : vector<4x128xf32> to vector<4x32xf32>
    %178 = arith.negf %177 : vector<4x32xf32>
    %179 = math.exp %178 : vector<4x32xf32>
    %cst_60 = arith.constant 1.000000e+00 : f32
    %180 = vector.broadcast %cst_60 : f32 to vector<4x32xf32>
    %181 = arith.addf %180, %179 : vector<4x32xf32>
    %182 = arith.divf %180, %181 : vector<4x32xf32>
    %183 = vector.extract_strided_slice %170 {offsets = [0, 64], sizes = [4, 32], strides = [1, 1]} : vector<4x128xf32> to vector<4x32xf32>
    %184 = math.tanh %183 : vector<4x32xf32>
    %185 = vector.extract_strided_slice %170 {offsets = [0, 96], sizes = [4, 32], strides = [1, 1]} : vector<4x128xf32> to vector<4x32xf32>
    %186 = arith.negf %185 : vector<4x32xf32>
    %187 = math.exp %186 : vector<4x32xf32>
    %cst_61 = arith.constant 1.000000e+00 : f32
    %188 = vector.broadcast %cst_61 : f32 to vector<4x32xf32>
    %189 = arith.addf %188, %187 : vector<4x32xf32>
    %190 = arith.divf %188, %189 : vector<4x32xf32>
    %191 = arith.mulf %182, %121 : vector<4x32xf32>
    %192 = arith.mulf %176, %184 : vector<4x32xf32>
    %193 = arith.addf %191, %192 : vector<4x32xf32>
    %194 = math.tanh %193 : vector<4x32xf32>
    %195 = arith.mulf %190, %194 : vector<4x32xf32>
    %cst_62 = arith.constant dense<0.000000e+00> : vector<4x176xf32>
    %196 = tpu.matmul %195, %5, %cst_62 {dimension_numbers = #tpu.dot_dimension_numbers<[1], [0], [0], [1], [0, 0, 1, 1], [], []>} : vector<4x32xf32>, vector<32x176xf32>, vector<4x176xf32> -> vector<4x176xf32>
    %197 = vector.extract_strided_slice %196 {offsets = [0, 0], sizes = [4, 32], strides = [1, 1]} : vector<4x176xf32> to vector<4x32xf32>
    %198 = vector.extract_strided_slice %196 {offsets = [0, 32], sizes = [4, 16], strides = [1, 1]} : vector<4x176xf32> to vector<4x16xf32>
    %199 = arith.addf %198, %45 : vector<4x16xf32>
    %200 = arith.negf %199 : vector<4x16xf32>
    %201 = math.exp %200 : vector<4x16xf32>
    %cst_63 = arith.constant 1.000000e+00 : f32
    %202 = vector.broadcast %cst_63 : f32 to vector<4x16xf32>
    %203 = arith.addf %202, %201 : vector<4x16xf32>
    %204 = arith.divf %202, %203 : vector<4x16xf32>
    %205 = vector.extract_strided_slice %196 {offsets = [0, 48], sizes = [4, 128], strides = [1, 1]} : vector<4x176xf32> to vector<4x128xf32>
    %206 = vector.shape_cast %197 : vector<4x32xf32> to vector<4x1x32xf32>
    %207 = vector.broadcast %206 : vector<4x1x32xf32> to vector<4x8x32xf32>
    %208 = arith.addf %32, %207 : vector<4x8x32xf32>
    %cst_64 = arith.constant 0.000000e+00 : f32
    %209 = vector.broadcast %cst_64 : f32 to vector<4x8x32xf32>
    %210 = arith.maximumf %208, %209 : vector<4x8x32xf32>
    %211 = arith.mulf %210, %43 : vector<4x8x32xf32>
    %cst_65 = arith.constant dense<0.000000e+00> : vector<4x8xf32>
    %212 = vector.multi_reduction <add>, %211, %cst_65 [2] : vector<4x8x32xf32> to vector<4x8xf32>
    %cst_66 = arith.constant -1.000000e+30 : f32
    %213 = vector.broadcast %cst_66 : f32 to vector<4x8xf32>
    %214 = arith.select %47, %212, %213 : vector<4x8xi1>, vector<4x8xf32>
    %cst_67 = arith.constant dense<0xFF800000> : vector<4xf32>
    %215 = vector.multi_reduction <maximumf>, %214, %cst_67 [1] : vector<4x8xf32> to vector<4xf32>
    %216 = vector.shape_cast %215 : vector<4xf32> to vector<4x1xf32>
    %217 = vector.broadcast %216 : vector<4x1xf32> to vector<4x8xf32>
    %218 = arith.subf %214, %217 : vector<4x8xf32>
    %219 = math.exp %218 : vector<4x8xf32>
    %cst_68 = arith.constant 0.000000e+00 : f32
    %220 = vector.broadcast %cst_68 : f32 to vector<4x8xf32>
    %221 = arith.select %47, %219, %220 : vector<4x8xi1>, vector<4x8xf32>
    %cst_69 = arith.constant dense<0.000000e+00> : vector<4xf32>
    %222 = vector.multi_reduction <add>, %221, %cst_69 [1] : vector<4x8xf32> to vector<4xf32>
    %223 = vector.shape_cast %222 : vector<4xf32> to vector<4x1xf32>
    %cst_70 = arith.constant 1.000000e-30 : f32
    %224 = vector.broadcast %cst_70 : f32 to vector<4x1xf32>
    %225 = arith.maximumf %223, %224 : vector<4x1xf32>
    %226 = tpu.reciprocal %225 {approx = true} : vector<4x1xf32> -> vector<4x1xf32>
    %227 = vector.broadcast %226 : vector<4x1xf32> to vector<4x8xf32>
    %228 = arith.mulf %221, %227 : vector<4x8xf32>
    %cst_71 = arith.constant 0.000000e+00 : f32
    %229 = vector.shape_cast %51 : vector<4x1xi1> to vector<4x1xi1>
    %230 = vector.broadcast %229 : vector<4x1xi1> to vector<4x8xi1>
    %231 = vector.broadcast %cst_71 : f32 to vector<4x8xf32>
    %232 = arith.select %230, %228, %231 : vector<4x8xi1>, vector<4x8xf32>
    %233 = vector.shape_cast %232 : vector<4x8xf32> to vector<4x8x1xf32>
    %234 = vector.broadcast %233 : vector<4x8x1xf32> to vector<4x8x16xf32>
    %235 = arith.mulf %0, %234 : vector<4x8x16xf32>
    %cst_72 = arith.constant dense<0.000000e+00> : vector<4x16xf32>
    %236 = vector.multi_reduction <add>, %235, %cst_72 [1] : vector<4x8x16xf32> to vector<4x16xf32>
    %237 = arith.mulf %204, %236 : vector<4x16xf32>
    %cst_73 = arith.constant dense<0.000000e+00> : vector<4x128xf32>
    %238 = tpu.matmul %237, %10, %cst_73 {dimension_numbers = #tpu.dot_dimension_numbers<[1], [0], [0], [1], [0, 0, 1, 1], [], []>} : vector<4x16xf32>, vector<16x128xf32>, vector<4x128xf32> -> vector<4x128xf32>
    %239 = arith.addf %238, %205 : vector<4x128xf32>
    %240 = vector.extract_strided_slice %40 {offsets = [2, 0, 0], sizes = [1, 4, 128], strides = [1, 1, 1]} : vector<6x4x128xf32> to vector<1x4x128xf32>
    %241 = vector.shape_cast %240 : vector<1x4x128xf32> to vector<4x128xf32>
    %242 = arith.addf %239, %241 : vector<4x128xf32>
    %243 = vector.extract_strided_slice %242 {offsets = [0, 0], sizes = [4, 32], strides = [1, 1]} : vector<4x128xf32> to vector<4x32xf32>
    %244 = arith.negf %243 : vector<4x32xf32>
    %245 = math.exp %244 : vector<4x32xf32>
    %cst_74 = arith.constant 1.000000e+00 : f32
    %246 = vector.broadcast %cst_74 : f32 to vector<4x32xf32>
    %247 = arith.addf %246, %245 : vector<4x32xf32>
    %248 = arith.divf %246, %247 : vector<4x32xf32>
    %249 = vector.extract_strided_slice %242 {offsets = [0, 32], sizes = [4, 32], strides = [1, 1]} : vector<4x128xf32> to vector<4x32xf32>
    %250 = arith.negf %249 : vector<4x32xf32>
    %251 = math.exp %250 : vector<4x32xf32>
    %cst_75 = arith.constant 1.000000e+00 : f32
    %252 = vector.broadcast %cst_75 : f32 to vector<4x32xf32>
    %253 = arith.addf %252, %251 : vector<4x32xf32>
    %254 = arith.divf %252, %253 : vector<4x32xf32>
    %255 = vector.extract_strided_slice %242 {offsets = [0, 64], sizes = [4, 32], strides = [1, 1]} : vector<4x128xf32> to vector<4x32xf32>
    %256 = math.tanh %255 : vector<4x32xf32>
    %257 = vector.extract_strided_slice %242 {offsets = [0, 96], sizes = [4, 32], strides = [1, 1]} : vector<4x128xf32> to vector<4x32xf32>
    %258 = arith.negf %257 : vector<4x32xf32>
    %259 = math.exp %258 : vector<4x32xf32>
    %cst_76 = arith.constant 1.000000e+00 : f32
    %260 = vector.broadcast %cst_76 : f32 to vector<4x32xf32>
    %261 = arith.addf %260, %259 : vector<4x32xf32>
    %262 = arith.divf %260, %261 : vector<4x32xf32>
    %263 = arith.mulf %254, %193 : vector<4x32xf32>
    %264 = arith.mulf %248, %256 : vector<4x32xf32>
    %265 = arith.addf %263, %264 : vector<4x32xf32>
    %266 = math.tanh %265 : vector<4x32xf32>
    %267 = arith.mulf %262, %266 : vector<4x32xf32>
    %cst_77 = arith.constant dense<0.000000e+00> : vector<4x176xf32>
    %268 = tpu.matmul %267, %5, %cst_77 {dimension_numbers = #tpu.dot_dimension_numbers<[1], [0], [0], [1], [0, 0, 1, 1], [], []>} : vector<4x32xf32>, vector<32x176xf32>, vector<4x176xf32> -> vector<4x176xf32>
    %269 = vector.extract_strided_slice %268 {offsets = [0, 0], sizes = [4, 32], strides = [1, 1]} : vector<4x176xf32> to vector<4x32xf32>
    %270 = vector.extract_strided_slice %268 {offsets = [0, 32], sizes = [4, 16], strides = [1, 1]} : vector<4x176xf32> to vector<4x16xf32>
    %271 = arith.addf %270, %45 : vector<4x16xf32>
    %272 = arith.negf %271 : vector<4x16xf32>
    %273 = math.exp %272 : vector<4x16xf32>
    %cst_78 = arith.constant 1.000000e+00 : f32
    %274 = vector.broadcast %cst_78 : f32 to vector<4x16xf32>
    %275 = arith.addf %274, %273 : vector<4x16xf32>
    %276 = arith.divf %274, %275 : vector<4x16xf32>
    %277 = vector.extract_strided_slice %268 {offsets = [0, 48], sizes = [4, 128], strides = [1, 1]} : vector<4x176xf32> to vector<4x128xf32>
    %278 = vector.shape_cast %269 : vector<4x32xf32> to vector<4x1x32xf32>
    %279 = vector.broadcast %278 : vector<4x1x32xf32> to vector<4x8x32xf32>
    %280 = arith.addf %32, %279 : vector<4x8x32xf32>
    %cst_79 = arith.constant 0.000000e+00 : f32
    %281 = vector.broadcast %cst_79 : f32 to vector<4x8x32xf32>
    %282 = arith.maximumf %280, %281 : vector<4x8x32xf32>
    %283 = arith.mulf %282, %43 : vector<4x8x32xf32>
    %cst_80 = arith.constant dense<0.000000e+00> : vector<4x8xf32>
    %284 = vector.multi_reduction <add>, %283, %cst_80 [2] : vector<4x8x32xf32> to vector<4x8xf32>
    %cst_81 = arith.constant -1.000000e+30 : f32
    %285 = vector.broadcast %cst_81 : f32 to vector<4x8xf32>
    %286 = arith.select %47, %284, %285 : vector<4x8xi1>, vector<4x8xf32>
    %cst_82 = arith.constant dense<0xFF800000> : vector<4xf32>
    %287 = vector.multi_reduction <maximumf>, %286, %cst_82 [1] : vector<4x8xf32> to vector<4xf32>
    %288 = vector.shape_cast %287 : vector<4xf32> to vector<4x1xf32>
    %289 = vector.broadcast %288 : vector<4x1xf32> to vector<4x8xf32>
    %290 = arith.subf %286, %289 : vector<4x8xf32>
    %291 = math.exp %290 : vector<4x8xf32>
    %cst_83 = arith.constant 0.000000e+00 : f32
    %292 = vector.broadcast %cst_83 : f32 to vector<4x8xf32>
    %293 = arith.select %47, %291, %292 : vector<4x8xi1>, vector<4x8xf32>
    %cst_84 = arith.constant dense<0.000000e+00> : vector<4xf32>
    %294 = vector.multi_reduction <add>, %293, %cst_84 [1] : vector<4x8xf32> to vector<4xf32>
    %295 = vector.shape_cast %294 : vector<4xf32> to vector<4x1xf32>
    %cst_85 = arith.constant 1.000000e-30 : f32
    %296 = vector.broadcast %cst_85 : f32 to vector<4x1xf32>
    %297 = arith.maximumf %295, %296 : vector<4x1xf32>
    %298 = tpu.reciprocal %297 {approx = true} : vector<4x1xf32> -> vector<4x1xf32>
    %299 = vector.broadcast %298 : vector<4x1xf32> to vector<4x8xf32>
    %300 = arith.mulf %293, %299 : vector<4x8xf32>
    %cst_86 = arith.constant 0.000000e+00 : f32
    %301 = vector.shape_cast %51 : vector<4x1xi1> to vector<4x1xi1>
    %302 = vector.broadcast %301 : vector<4x1xi1> to vector<4x8xi1>
    %303 = vector.broadcast %cst_86 : f32 to vector<4x8xf32>
    %304 = arith.select %302, %300, %303 : vector<4x8xi1>, vector<4x8xf32>
    %305 = vector.shape_cast %304 : vector<4x8xf32> to vector<4x8x1xf32>
    %306 = vector.broadcast %305 : vector<4x8x1xf32> to vector<4x8x16xf32>
    %307 = arith.mulf %0, %306 : vector<4x8x16xf32>
    %cst_87 = arith.constant dense<0.000000e+00> : vector<4x16xf32>
    %308 = vector.multi_reduction <add>, %307, %cst_87 [1] : vector<4x8x16xf32> to vector<4x16xf32>
    %309 = arith.mulf %276, %308 : vector<4x16xf32>
    %cst_88 = arith.constant dense<0.000000e+00> : vector<4x128xf32>
    %310 = tpu.matmul %309, %10, %cst_88 {dimension_numbers = #tpu.dot_dimension_numbers<[1], [0], [0], [1], [0, 0, 1, 1], [], []>} : vector<4x16xf32>, vector<16x128xf32>, vector<4x128xf32> -> vector<4x128xf32>
    %311 = arith.addf %310, %277 : vector<4x128xf32>
    %312 = vector.extract_strided_slice %40 {offsets = [3, 0, 0], sizes = [1, 4, 128], strides = [1, 1, 1]} : vector<6x4x128xf32> to vector<1x4x128xf32>
    %313 = vector.shape_cast %312 : vector<1x4x128xf32> to vector<4x128xf32>
    %314 = arith.addf %311, %313 : vector<4x128xf32>
    %315 = vector.extract_strided_slice %314 {offsets = [0, 0], sizes = [4, 32], strides = [1, 1]} : vector<4x128xf32> to vector<4x32xf32>
    %316 = arith.negf %315 : vector<4x32xf32>
    %317 = math.exp %316 : vector<4x32xf32>
    %cst_89 = arith.constant 1.000000e+00 : f32
    %318 = vector.broadcast %cst_89 : f32 to vector<4x32xf32>
    %319 = arith.addf %318, %317 : vector<4x32xf32>
    %320 = arith.divf %318, %319 : vector<4x32xf32>
    %321 = vector.extract_strided_slice %314 {offsets = [0, 32], sizes = [4, 32], strides = [1, 1]} : vector<4x128xf32> to vector<4x32xf32>
    %322 = arith.negf %321 : vector<4x32xf32>
    %323 = math.exp %322 : vector<4x32xf32>
    %cst_90 = arith.constant 1.000000e+00 : f32
    %324 = vector.broadcast %cst_90 : f32 to vector<4x32xf32>
    %325 = arith.addf %324, %323 : vector<4x32xf32>
    %326 = arith.divf %324, %325 : vector<4x32xf32>
    %327 = vector.extract_strided_slice %314 {offsets = [0, 64], sizes = [4, 32], strides = [1, 1]} : vector<4x128xf32> to vector<4x32xf32>
    %328 = math.tanh %327 : vector<4x32xf32>
    %329 = vector.extract_strided_slice %314 {offsets = [0, 96], sizes = [4, 32], strides = [1, 1]} : vector<4x128xf32> to vector<4x32xf32>
    %330 = arith.negf %329 : vector<4x32xf32>
    %331 = math.exp %330 : vector<4x32xf32>
    %cst_91 = arith.constant 1.000000e+00 : f32
    %332 = vector.broadcast %cst_91 : f32 to vector<4x32xf32>
    %333 = arith.addf %332, %331 : vector<4x32xf32>
    %334 = arith.divf %332, %333 : vector<4x32xf32>
    %335 = arith.mulf %326, %265 : vector<4x32xf32>
    %336 = arith.mulf %320, %328 : vector<4x32xf32>
    %337 = arith.addf %335, %336 : vector<4x32xf32>
    %338 = math.tanh %337 : vector<4x32xf32>
    %339 = arith.mulf %334, %338 : vector<4x32xf32>
    %cst_92 = arith.constant dense<0.000000e+00> : vector<4x176xf32>
    %340 = tpu.matmul %339, %5, %cst_92 {dimension_numbers = #tpu.dot_dimension_numbers<[1], [0], [0], [1], [0, 0, 1, 1], [], []>} : vector<4x32xf32>, vector<32x176xf32>, vector<4x176xf32> -> vector<4x176xf32>
    %341 = vector.extract_strided_slice %340 {offsets = [0, 0], sizes = [4, 32], strides = [1, 1]} : vector<4x176xf32> to vector<4x32xf32>
    %342 = vector.extract_strided_slice %340 {offsets = [0, 32], sizes = [4, 16], strides = [1, 1]} : vector<4x176xf32> to vector<4x16xf32>
    %343 = arith.addf %342, %45 : vector<4x16xf32>
    %344 = arith.negf %343 : vector<4x16xf32>
    %345 = math.exp %344 : vector<4x16xf32>
    %cst_93 = arith.constant 1.000000e+00 : f32
    %346 = vector.broadcast %cst_93 : f32 to vector<4x16xf32>
    %347 = arith.addf %346, %345 : vector<4x16xf32>
    %348 = arith.divf %346, %347 : vector<4x16xf32>
    %349 = vector.extract_strided_slice %340 {offsets = [0, 48], sizes = [4, 128], strides = [1, 1]} : vector<4x176xf32> to vector<4x128xf32>
    %350 = vector.shape_cast %341 : vector<4x32xf32> to vector<4x1x32xf32>
    %351 = vector.broadcast %350 : vector<4x1x32xf32> to vector<4x8x32xf32>
    %352 = arith.addf %32, %351 : vector<4x8x32xf32>
    %cst_94 = arith.constant 0.000000e+00 : f32
    %353 = vector.broadcast %cst_94 : f32 to vector<4x8x32xf32>
    %354 = arith.maximumf %352, %353 : vector<4x8x32xf32>
    %355 = arith.mulf %354, %43 : vector<4x8x32xf32>
    %cst_95 = arith.constant dense<0.000000e+00> : vector<4x8xf32>
    %356 = vector.multi_reduction <add>, %355, %cst_95 [2] : vector<4x8x32xf32> to vector<4x8xf32>
    %cst_96 = arith.constant -1.000000e+30 : f32
    %357 = vector.broadcast %cst_96 : f32 to vector<4x8xf32>
    %358 = arith.select %47, %356, %357 : vector<4x8xi1>, vector<4x8xf32>
    %cst_97 = arith.constant dense<0xFF800000> : vector<4xf32>
    %359 = vector.multi_reduction <maximumf>, %358, %cst_97 [1] : vector<4x8xf32> to vector<4xf32>
    %360 = vector.shape_cast %359 : vector<4xf32> to vector<4x1xf32>
    %361 = vector.broadcast %360 : vector<4x1xf32> to vector<4x8xf32>
    %362 = arith.subf %358, %361 : vector<4x8xf32>
    %363 = math.exp %362 : vector<4x8xf32>
    %cst_98 = arith.constant 0.000000e+00 : f32
    %364 = vector.broadcast %cst_98 : f32 to vector<4x8xf32>
    %365 = arith.select %47, %363, %364 : vector<4x8xi1>, vector<4x8xf32>
    %cst_99 = arith.constant dense<0.000000e+00> : vector<4xf32>
    %366 = vector.multi_reduction <add>, %365, %cst_99 [1] : vector<4x8xf32> to vector<4xf32>
    %367 = vector.shape_cast %366 : vector<4xf32> to vector<4x1xf32>
    %cst_100 = arith.constant 1.000000e-30 : f32
    %368 = vector.broadcast %cst_100 : f32 to vector<4x1xf32>
    %369 = arith.maximumf %367, %368 : vector<4x1xf32>
    %370 = tpu.reciprocal %369 {approx = true} : vector<4x1xf32> -> vector<4x1xf32>
    %371 = vector.broadcast %370 : vector<4x1xf32> to vector<4x8xf32>
    %372 = arith.mulf %365, %371 : vector<4x8xf32>
    %cst_101 = arith.constant 0.000000e+00 : f32
    %373 = vector.shape_cast %51 : vector<4x1xi1> to vector<4x1xi1>
    %374 = vector.broadcast %373 : vector<4x1xi1> to vector<4x8xi1>
    %375 = vector.broadcast %cst_101 : f32 to vector<4x8xf32>
    %376 = arith.select %374, %372, %375 : vector<4x8xi1>, vector<4x8xf32>
    %377 = vector.shape_cast %376 : vector<4x8xf32> to vector<4x8x1xf32>
    %378 = vector.broadcast %377 : vector<4x8x1xf32> to vector<4x8x16xf32>
    %379 = arith.mulf %0, %378 : vector<4x8x16xf32>
    %cst_102 = arith.constant dense<0.000000e+00> : vector<4x16xf32>
    %380 = vector.multi_reduction <add>, %379, %cst_102 [1] : vector<4x8x16xf32> to vector<4x16xf32>
    %381 = arith.mulf %348, %380 : vector<4x16xf32>
    %cst_103 = arith.constant dense<0.000000e+00> : vector<4x128xf32>
    %382 = tpu.matmul %381, %10, %cst_103 {dimension_numbers = #tpu.dot_dimension_numbers<[1], [0], [0], [1], [0, 0, 1, 1], [], []>} : vector<4x16xf32>, vector<16x128xf32>, vector<4x128xf32> -> vector<4x128xf32>
    %383 = arith.addf %382, %349 : vector<4x128xf32>
    %384 = vector.extract_strided_slice %40 {offsets = [4, 0, 0], sizes = [1, 4, 128], strides = [1, 1, 1]} : vector<6x4x128xf32> to vector<1x4x128xf32>
    %385 = vector.shape_cast %384 : vector<1x4x128xf32> to vector<4x128xf32>
    %386 = arith.addf %383, %385 : vector<4x128xf32>
    %387 = vector.extract_strided_slice %386 {offsets = [0, 0], sizes = [4, 32], strides = [1, 1]} : vector<4x128xf32> to vector<4x32xf32>
    %388 = arith.negf %387 : vector<4x32xf32>
    %389 = math.exp %388 : vector<4x32xf32>
    %cst_104 = arith.constant 1.000000e+00 : f32
    %390 = vector.broadcast %cst_104 : f32 to vector<4x32xf32>
    %391 = arith.addf %390, %389 : vector<4x32xf32>
    %392 = arith.divf %390, %391 : vector<4x32xf32>
    %393 = vector.extract_strided_slice %386 {offsets = [0, 32], sizes = [4, 32], strides = [1, 1]} : vector<4x128xf32> to vector<4x32xf32>
    %394 = arith.negf %393 : vector<4x32xf32>
    %395 = math.exp %394 : vector<4x32xf32>
    %cst_105 = arith.constant 1.000000e+00 : f32
    %396 = vector.broadcast %cst_105 : f32 to vector<4x32xf32>
    %397 = arith.addf %396, %395 : vector<4x32xf32>
    %398 = arith.divf %396, %397 : vector<4x32xf32>
    %399 = vector.extract_strided_slice %386 {offsets = [0, 64], sizes = [4, 32], strides = [1, 1]} : vector<4x128xf32> to vector<4x32xf32>
    %400 = math.tanh %399 : vector<4x32xf32>
    %401 = vector.extract_strided_slice %386 {offsets = [0, 96], sizes = [4, 32], strides = [1, 1]} : vector<4x128xf32> to vector<4x32xf32>
    %402 = arith.negf %401 : vector<4x32xf32>
    %403 = math.exp %402 : vector<4x32xf32>
    %cst_106 = arith.constant 1.000000e+00 : f32
    %404 = vector.broadcast %cst_106 : f32 to vector<4x32xf32>
    %405 = arith.addf %404, %403 : vector<4x32xf32>
    %406 = arith.divf %404, %405 : vector<4x32xf32>
    %407 = arith.mulf %398, %337 : vector<4x32xf32>
    %408 = arith.mulf %392, %400 : vector<4x32xf32>
    %409 = arith.addf %407, %408 : vector<4x32xf32>
    %410 = math.tanh %409 : vector<4x32xf32>
    %411 = arith.mulf %406, %410 : vector<4x32xf32>
    %cst_107 = arith.constant dense<0.000000e+00> : vector<4x176xf32>
    %412 = tpu.matmul %411, %5, %cst_107 {dimension_numbers = #tpu.dot_dimension_numbers<[1], [0], [0], [1], [0, 0, 1, 1], [], []>} : vector<4x32xf32>, vector<32x176xf32>, vector<4x176xf32> -> vector<4x176xf32>
    %413 = vector.extract_strided_slice %412 {offsets = [0, 0], sizes = [4, 32], strides = [1, 1]} : vector<4x176xf32> to vector<4x32xf32>
    %414 = vector.extract_strided_slice %412 {offsets = [0, 32], sizes = [4, 16], strides = [1, 1]} : vector<4x176xf32> to vector<4x16xf32>
    %415 = arith.addf %414, %45 : vector<4x16xf32>
    %416 = arith.negf %415 : vector<4x16xf32>
    %417 = math.exp %416 : vector<4x16xf32>
    %cst_108 = arith.constant 1.000000e+00 : f32
    %418 = vector.broadcast %cst_108 : f32 to vector<4x16xf32>
    %419 = arith.addf %418, %417 : vector<4x16xf32>
    %420 = arith.divf %418, %419 : vector<4x16xf32>
    %421 = vector.extract_strided_slice %412 {offsets = [0, 48], sizes = [4, 128], strides = [1, 1]} : vector<4x176xf32> to vector<4x128xf32>
    %422 = vector.shape_cast %413 : vector<4x32xf32> to vector<4x1x32xf32>
    %423 = vector.broadcast %422 : vector<4x1x32xf32> to vector<4x8x32xf32>
    %424 = arith.addf %32, %423 : vector<4x8x32xf32>
    %cst_109 = arith.constant 0.000000e+00 : f32
    %425 = vector.broadcast %cst_109 : f32 to vector<4x8x32xf32>
    %426 = arith.maximumf %424, %425 : vector<4x8x32xf32>
    %427 = arith.mulf %426, %43 : vector<4x8x32xf32>
    %cst_110 = arith.constant dense<0.000000e+00> : vector<4x8xf32>
    %428 = vector.multi_reduction <add>, %427, %cst_110 [2] : vector<4x8x32xf32> to vector<4x8xf32>
    %cst_111 = arith.constant -1.000000e+30 : f32
    %429 = vector.broadcast %cst_111 : f32 to vector<4x8xf32>
    %430 = arith.select %47, %428, %429 : vector<4x8xi1>, vector<4x8xf32>
    %cst_112 = arith.constant dense<0xFF800000> : vector<4xf32>
    %431 = vector.multi_reduction <maximumf>, %430, %cst_112 [1] : vector<4x8xf32> to vector<4xf32>
    %432 = vector.shape_cast %431 : vector<4xf32> to vector<4x1xf32>
    %433 = vector.broadcast %432 : vector<4x1xf32> to vector<4x8xf32>
    %434 = arith.subf %430, %433 : vector<4x8xf32>
    %435 = math.exp %434 : vector<4x8xf32>
    %cst_113 = arith.constant 0.000000e+00 : f32
    %436 = vector.broadcast %cst_113 : f32 to vector<4x8xf32>
    %437 = arith.select %47, %435, %436 : vector<4x8xi1>, vector<4x8xf32>
    %cst_114 = arith.constant dense<0.000000e+00> : vector<4xf32>
    %438 = vector.multi_reduction <add>, %437, %cst_114 [1] : vector<4x8xf32> to vector<4xf32>
    %439 = vector.shape_cast %438 : vector<4xf32> to vector<4x1xf32>
    %cst_115 = arith.constant 1.000000e-30 : f32
    %440 = vector.broadcast %cst_115 : f32 to vector<4x1xf32>
    %441 = arith.maximumf %439, %440 : vector<4x1xf32>
    %442 = tpu.reciprocal %441 {approx = true} : vector<4x1xf32> -> vector<4x1xf32>
    %443 = vector.broadcast %442 : vector<4x1xf32> to vector<4x8xf32>
    %444 = arith.mulf %437, %443 : vector<4x8xf32>
    %cst_116 = arith.constant 0.000000e+00 : f32
    %445 = vector.shape_cast %51 : vector<4x1xi1> to vector<4x1xi1>
    %446 = vector.broadcast %445 : vector<4x1xi1> to vector<4x8xi1>
    %447 = vector.broadcast %cst_116 : f32 to vector<4x8xf32>
    %448 = arith.select %446, %444, %447 : vector<4x8xi1>, vector<4x8xf32>
    %449 = vector.shape_cast %448 : vector<4x8xf32> to vector<4x8x1xf32>
    %450 = vector.broadcast %449 : vector<4x8x1xf32> to vector<4x8x16xf32>
    %451 = arith.mulf %0, %450 : vector<4x8x16xf32>
    %cst_117 = arith.constant dense<0.000000e+00> : vector<4x16xf32>
    %452 = vector.multi_reduction <add>, %451, %cst_117 [1] : vector<4x8x16xf32> to vector<4x16xf32>
    %453 = arith.mulf %420, %452 : vector<4x16xf32>
    %cst_118 = arith.constant dense<0.000000e+00> : vector<4x128xf32>
    %454 = tpu.matmul %453, %10, %cst_118 {dimension_numbers = #tpu.dot_dimension_numbers<[1], [0], [0], [1], [0, 0, 1, 1], [], []>} : vector<4x16xf32>, vector<16x128xf32>, vector<4x128xf32> -> vector<4x128xf32>
    %455 = arith.addf %454, %421 : vector<4x128xf32>
    %456 = vector.extract_strided_slice %40 {offsets = [5, 0, 0], sizes = [1, 4, 128], strides = [1, 1, 1]} : vector<6x4x128xf32> to vector<1x4x128xf32>
    %457 = vector.shape_cast %456 : vector<1x4x128xf32> to vector<4x128xf32>
    %458 = arith.addf %455, %457 : vector<4x128xf32>
    %459 = vector.extract_strided_slice %458 {offsets = [0, 0], sizes = [4, 32], strides = [1, 1]} : vector<4x128xf32> to vector<4x32xf32>
    %460 = arith.negf %459 : vector<4x32xf32>
    %461 = math.exp %460 : vector<4x32xf32>
    %cst_119 = arith.constant 1.000000e+00 : f32
    %462 = vector.broadcast %cst_119 : f32 to vector<4x32xf32>
    %463 = arith.addf %462, %461 : vector<4x32xf32>
    %464 = arith.divf %462, %463 : vector<4x32xf32>
    %465 = vector.extract_strided_slice %458 {offsets = [0, 32], sizes = [4, 32], strides = [1, 1]} : vector<4x128xf32> to vector<4x32xf32>
    %466 = arith.negf %465 : vector<4x32xf32>
    %467 = math.exp %466 : vector<4x32xf32>
    %cst_120 = arith.constant 1.000000e+00 : f32
    %468 = vector.broadcast %cst_120 : f32 to vector<4x32xf32>
    %469 = arith.addf %468, %467 : vector<4x32xf32>
    %470 = arith.divf %468, %469 : vector<4x32xf32>
    %471 = vector.extract_strided_slice %458 {offsets = [0, 64], sizes = [4, 32], strides = [1, 1]} : vector<4x128xf32> to vector<4x32xf32>
    %472 = math.tanh %471 : vector<4x32xf32>
    %473 = vector.extract_strided_slice %458 {offsets = [0, 96], sizes = [4, 32], strides = [1, 1]} : vector<4x128xf32> to vector<4x32xf32>
    %474 = arith.negf %473 : vector<4x32xf32>
    %475 = math.exp %474 : vector<4x32xf32>
    %cst_121 = arith.constant 1.000000e+00 : f32
    %476 = vector.broadcast %cst_121 : f32 to vector<4x32xf32>
    %477 = arith.addf %476, %475 : vector<4x32xf32>
    %478 = arith.divf %476, %477 : vector<4x32xf32>
    %479 = arith.mulf %470, %409 : vector<4x32xf32>
    %480 = arith.mulf %464, %472 : vector<4x32xf32>
    %481 = arith.addf %479, %480 : vector<4x32xf32>
    %482 = math.tanh %481 : vector<4x32xf32>
    %483 = arith.mulf %478, %482 : vector<4x32xf32>
    %484 = tpu.concatenate %123, %195, %267, %339, %411, %483 in 0 : vector<4x32xf32>, vector<4x32xf32>, vector<4x32xf32>, vector<4x32xf32>, vector<4x32xf32>, vector<4x32xf32> -> vector<24x32xf32>
    %485 = tpu.concatenate %88, %160, %232, %304, %376, %448 in 0 : vector<4x8xf32>, vector<4x8xf32>, vector<4x8xf32>, vector<4x8xf32>, vector<4x8xf32>, vector<4x8xf32> -> vector<24x8xf32>
    %cst_122 = arith.constant dense<0.000000e+00> : vector<24x16xf32>
    %486 = tpu.matmul %484, %11, %cst_122 {dimension_numbers = #tpu.dot_dimension_numbers<[1], [0], [0], [1], [0, 0, 1, 1], [], []>} : vector<24x32xf32>, vector<32x16xf32>, vector<24x16xf32> -> vector<24x16xf32>
    %487 = vector.broadcast %15 : vector<1x16xf32> to vector<24x16xf32>
    %488 = arith.addf %486, %487 : vector<24x16xf32>
    %cst_123 = arith.constant 5.000000e-01 : f32
    %489 = vector.broadcast %cst_123 : f32 to vector<24x1xf32>
    %490 = arith.cmpf ogt, %2, %489 : vector<24x1xf32>
    %cst_124 = arith.constant 0.000000e+00 : f32
    %491 = vector.shape_cast %490 : vector<24x1xi1> to vector<24x1xi1>
    %492 = vector.broadcast %491 : vector<24x1xi1> to vector<24x16xi1>
    %493 = vector.broadcast %cst_124 : f32 to vector<24x16xf32>
    %494 = arith.select %492, %488, %493 : vector<24x16xi1>, vector<24x16xf32>
    %c0_125 = arith.constant 0 : index
    %c0_126 = arith.constant 0 : index
    %495 = vector.load %arg4[%c0_125, %c0_126] : memref<24x16xf32, #tpu.memory_space<vmem>>, vector<24x16xf32>
    tpu.vector_store %arg4[%c0_125, %c0_126], %494 {strides = array<i32>} : memref<24x16xf32, #tpu.memory_space<vmem>>, vector<24x16xf32>,
    %cst_127 = arith.constant 0.000000e+00 : f32
    %496 = vector.shape_cast %490 : vector<24x1xi1> to vector<24x1xi1>
    %497 = vector.broadcast %496 : vector<24x1xi1> to vector<24x8xi1>
    %498 = vector.broadcast %cst_127 : f32 to vector<24x8xf32>
    %499 = arith.select %497, %485, %498 : vector<24x8xi1>, vector<24x8xf32>
    %c0_128 = arith.constant 0 : index
    %c0_129 = arith.constant 0 : index
    %500 = vector.load %arg5[%c0_128, %c0_129] : memref<24x8xf32, #tpu.memory_space<vmem>>, vector<24x8xf32>
    tpu.vector_store %arg5[%c0_128, %c0_129], %499 {strides = array<i32>} : memref<24x8xf32, #tpu.memory_space<vmem>>, vector<24x8xf32>,
    return
  }
}

</mosaic_0001>

<bundles_post_ra>
// kernel: tpu_custom_call.1
= control target key start
LH: loop header
LB: loop body
LE: loop exit
PB: predicated region body
PF: predicated region fallthrough
CT: control target
= control target key end

     0   :  { %11 = vsyncpa [#allocation3], 0  ;;  %s3309_s18 = smov [#allocation2]   ;;  %s4174_s0 = inlined_call_operand.vmem [shape: f32[40,17], index: 0, kind: input, shape index: {}]   ;;  %s4175_s1 = inlined_call_operand.vmem [shape: f32[4,8,16], index: 1, kind: input, shape index: {}]   ;;  %s4176_s2 = inlined_call_operand.hbm [shape: f32[160,256], index: 2, kind: input, shape index: {}]   ;;  %s4177_s3 = inlined_call_operand.vmem [shape: f32[1,768], index: 3, kind: input, shape index: {}]   ;;  %s4178_s4 = inlined_call_operand.vmem [shape: f32[24,16], index: 4, kind: output, shape index: {0}]   ;;  %s4179_s5 = inlined_call_operand.vmem [shape: f32[24,8], index: 5, kind: output, shape index: {1}]  }
   0x1   :  { %s21_s19 = sshll.u32 %s3309_s18, 4  ;;  %s3285_s22 = scalar_lea.hbm %s4176_s2, 5120  ;;  %s22_s19 = int_to_ptr.vmem [resolvable:$true] %s21_s19 }
   0x2   :  { %p3286_p0 = scmp.ne.s32.totalorder %s4176_s2, %s3285_s22  ;;  %p3289_p1 = scmp.lt.u32.totalorder %s3285_s22, %s4176_s2 }
   0x4   :  { %p3291_p2 = pnand %p3289_p1, %p3286_p0 }
   0x6   :  { %3294 = shalt.err (!%p3291_p2)
}
   0x7   :  { %s3295_s27 = scalar_lea.vmem %s22_s19, 5120  ;;  %p3300_p4 = scmp.lt.s32.totalorder %s22_s19, %s22_s19 }
   0x8   :  { %p3296_p3 = scmp.ne.s32.totalorder %s22_s19, %s3295_s27  ;;  %p3301_p5 = scmp.lt.s32.totalorder %s3295_s27, %s3295_s27 }
   0xa   :  { %p3302_p6 = por %p3301_p5, %p3300_p4 }
   0xc   :  { %p3303_p7 = pnand %p3302_p6, %p3296_p3 }
   0xe   :  { %3306 = shalt.err (!%p3303_p7)
}
   0xf   :  { %s3310_s28 = smov 256   ;;  %s3311_s29 = smov 16  }
  0x10   :  { %27 = dma.hbm_to_vmem [thread:$0]  %s4176_s2, 5120, %s22_s19, [#allocation3], %s3310_s28, %s3310_s28, %s3311_s29  }
  0x11   :  { %3307 = dma.done.wait [#allocation3], 5120  }
  0x12   :  { %3308 = vsyncadd [#allocation3], 4294962176  ;;  %v3312_v0 = vmov 0.0|0.0   ;;  %vm3313_vm0 = vmmov 0   ;;  %v3314_v1 = vmov 0.0   ;;  %v50_v3 = vld [vmem:[#allocation2 + $0x40] sm:$0xff] }
  0x13   :  { %3078 = vmatprep.subr.bf16.mxu0 %v3312_v0  ;;  %3091 = vmatprep.subr.bf16.mxu1 %v3312_v0  ;;  %v3373_v2 = vld [vmem:[%s4174_s0 + $0x20] sm:$0xf]  ;;  %v51_v4 = vld [vmem:[#allocation2 + $0x50] sm:$0xff]  ;;  %v43_v16 = vld [vmem:[#allocation2 + $0x8] sm:$0xff]  ;;  %vm72_vm1 = vcmask 130048   ;;  %vm110_vm2 = vcmask 1041409  }
  0x14   :  { %2986 = vmatprep.mubr.msk.f32.mxu0 %vm3313_vm0, %v3314_v1  ;;  %3010 = vmatprep.mubr.msk.f32.mxu1 %vm3313_vm0, %v3314_v1  ;;  %v3079_v5 = vpack.c.bf16 %v51_v4, %v50_v3  ;;  %v52_v6 = vld [vmem:[#allocation2 + $0x60] sm:$0xff]  ;;  %v53_v7 = vld [vmem:[#allocation2 + $0x70] sm:$0xff]  ;;  %v45_v17 = vld [vmem:[#allocation2 + $0x18] sm:$0xff]  ;;  %vm112_vm3 = vcmask 1042434   ;;  %vm114_vm4 = vcmask 1043459   ;;  %vm128_vm5 = vcmask 261120  }
  0x15   :  { %118 = vrot.lane.b32.xlu0 %v3373_v2, %s3311_s29  ;;  %v3082_v8 = vpack.c.bf16 %v53_v7, %v52_v6  ;;  %v54_v9 = vld [vmem:[#allocation2 + $0x80] sm:$0xff]  ;;  %v55_v10 = vld [vmem:[#allocation2 + $0x90] sm:$0xff]  ;;  %v3382_v18 = vpack.c.bf16 %v45_v17, %v43_v16  ;;  %v47_v21 = vld [vmem:[#allocation2 + $0x28] sm:$0xff]  ;;  %vm503_vm7 = vcmask 60416   ;;  %s3316_s7 = smov 32   ;;  %s3317_s8 = smov 80  }
  0x16   :  { %3080 = vmatpush3.bf16.msra.mxu0 %v3079_v5  ;;  %v3377_v11 = vpack.c.bf16 %v55_v10, %v54_v9  ;;  %v58_v12 = vld [vmem:[#allocation2 + $0xc0] sm:$0xff]  ;;  %v59_v13 = vld [vmem:[#allocation2 + $0xd0] sm:$0xff]  ;;  %v49_v22 = vld [vmem:[#allocation2 + $0x38] sm:$0xff]  ;;  %s3318_s2 = smov 96   ;;  %vm783_vm9 = vcmask 654336   ;;  %s3319_s11 = smov 64  }
  0x17   :  { %3081 = vmatprep.subr.bf16.mxu0 %v3312_v0  ;;  %v3092_v14 = vpack.c.bf16 %v59_v13, %v58_v12  ;;  %v37_v15 = vld [vmem:[%s4174_s0] sm:$0xff]  ;;  %v44_v20 = vld [vmem:[#allocation2 + $0x10] sm:$0xff]  ;;  %v3389_v24 = vpack.c.bf16 %v49_v22, %v47_v21  ;;  %v38_v25 = vld [vmem:[%s4174_s0 + $0x8] sm:$0xff]  ;;  %vm2735_vm10 = vcmask 1043456   ;;  %vm2879_vm14 = vcmask 64512  }
  0x18   :  { %v42_v19 = vld [vmem:[#allocation2] sm:$0xff]  ;;  %v39_v26 = vld [vmem:[%s4174_s0 + $0x10] sm:$0xff]  ;;  %v3414_v28 = vld [vmem:[%s4175_s1 + $0x8] sm:$0xff] }
  0x19   :  { %3093 = vmatpush3.bf16.msra.mxu1 %v3092_v14  ;;  %v3385_v23 = vpack.c.bf16 %v44_v20, %v42_v19  ;;  %v3409_v27 = vld [vmem:[%s4175_s1] sm:$0xff]  ;;  %v3419_v29 = vld [vmem:[%s4175_s1 + $0x10] sm:$0xff]  ;;  %v80_v31 = vsel %vm72_vm1, %v3414_v28, 0.0  ;;  %v3428_v32 = vld [vmem:[%s4175_s1 + $0x18] sm:$0xff] }
  0x1a   :  { %3083 = vmatpush3.bf16.msra.mxu0 %v3082_v8  ;;  %3106 = vmatprep.subr.bf16.mxu1 %v3382_v18  ;;  %v73_v30 = vsel %vm72_vm1, %v3409_v27, 0.0  ;;  %v81_v34 = vrot.slane %v80_v31, 4  ;;  %v87_v35 = vsel %vm72_vm1, %v3419_v29, 0.0  ;;  %v94_v37 = vsel %vm72_vm1, %v3428_v32, 0.0  ;;  %v56_v6 = vld [vmem:[#allocation2 + $0xa0] sm:$0xff]  ;;  %v57_v7 = vld [vmem:[#allocation2 + $0xb0] sm:$0xff] }
  0x1b   :  { %3085 = vmatprep.subr.bf16.mxu0 %v3377_v11  ;;  %v74_v33 = vrot.slane %v73_v30, 4  ;;  %v88_v36 = vrot.slane %v87_v35, 4  ;;  %v95_v40 = vrot.slane %v94_v37, 4  ;;  %v3089_v9 = vpack.c.bf16 %v57_v7, %v56_v6  ;;  %v46_v10 = vld [vmem:[#allocation2 + $0x20] sm:$0xff] }
  0x1c   :  { %3011 = vmatmul.mubr.msk.f32.vlgmr.msra.gmra.mrb[0].mxu1 %vm72_vm1, %v37_v15  ;;  %v82_v39 = vadd.f32 %v81_v34, %v80_v31  ;;  %v2892_v19 = vld [vmem:[%s4177_s3 + $0x4] ss:$0 sm:$0xff] }
  0x1d   :  { %3013 = vmatprep.mubr.msk.f32.mxu1 %vm3313_vm0, %v3314_v1  ;;  %3108 = vmatpush1.bf16.msra.mxu1 %v3385_v23  ;;  %v75_v38 = vadd.f32 %v74_v33, %v73_v30  ;;  %v89_v41 = vadd.f32 %v88_v36, %v87_v35  ;;  %v96_v44 = vadd.f32 %v95_v40, %v94_v37  ;;  %v3315_v35 = vmov 1966171168  }
  0x1e   :  { %3110 = vmatprep.subr.bf16.mxu1 %v3389_v24  ;;  %v83_v43 = vrot.slane %v82_v39, 2  ;;  %v594_v36 = vunpack.c.l.s4 %v3315_v35  ;;  %v596_v37 = vlaneseq }
  0x1f   :  { %v76_v42 = vrot.slane %v75_v38, 2  ;;  %v90_v45 = vrot.slane %v89_v41, 2  ;;  %v97_v48 = vrot.slane %v96_v44, 2 }
  0x20   :  { %3014 = vmatmul.mubr.msk.f32.gmra.mrb[2].mxu1 %vm72_vm1, %v38_v25  ;;  %v84_v47 = vadd.f32 %v83_v43, %v82_v39  ;;  %v3480_v39 = vshrl.u32 %v596_v37, 7 }
  0x21   :  { %3016 = vmatprep.mubr.msk.f32.mxu1 %vm3313_vm0, %v3314_v1  ;;  %v77_v46 = vadd.f32 %v76_v42, %v75_v38  ;;  %v91_v49 = vadd.f32 %v90_v45, %v89_v41  ;;  %v98_v52 = vadd.f32 %v97_v48, %v96_v44  ;;  %v595_v38 = vunpack.c.0.s8 %v594_v36  ;;  %v2898_v45 = vld [vmem:[%s4177_s3] ss:$0 sm:$0xff] }
  0x22   :  { %v85_v51 = vrot.slane %v84_v47, 1  ;;  %v3490_v43 = vsub.s32 0, %v3480_v39 }
  0x23   :  { %v78_v50 = vrot.slane %v77_v46, 1  ;;  %v92_v53 = vrot.slane %v91_v49, 1  ;;  %v99_v56 = vrot.slane %v98_v52, 1  ;;  %v3483_v40 = vsub.s32 %v595_v38, %v3480_v39 }
  0x24   :  { %3017 = vmatmul.mubr.msk.f32.gmra.mrb[4].mxu1 %vm72_vm1, %v39_v26  ;;  %v86_v55 = vadd.f32 %v85_v51, %v84_v47 }
  0x25   :  { %952 = vmatprep.mubr.f32.mxu1 %v3314_v1  ;;  %v79_v54 = vadd.f32 %v78_v50, %v77_v46  ;;  %v93_v57 = vadd.f32 %v92_v53, %v91_v49  ;;  %v100_v60 = vadd.f32 %v99_v56, %v98_v52 }
  0x26   :  { %v103_v59 = vmul.f32 0.125, %v86_v55 }
  0x27   :  { %v102_v58 = vmul.f32 0.125, %v79_v54  ;;  %v104_v61 = vmul.f32 0.125, %v93_v57  ;;  %v105_v63 = vmul.f32 0.125, %v100_v60 }
  0x29   :  { %v111_v62 = vsel %vm110_vm2, %v103_v59, %v102_v58  ;;  %v3514_v59 = vld [vmem:[%s4177_s3 + $0x5] ss:$0 sm:$0xff] }
  0x2a   :  { %v113_v3 = vsel %vm112_vm3, %v104_v61, %v111_v62 }
  0x2b   :  { %v115_v4 = vsel %vm114_vm4, %v105_v63, %v113_v3 }
  0x87   :  { %v119_v5 = vpop.permute.xlu0 %118 }
  0x88   :  { %v121_v8 = vsel %vm72_vm1, %v115_v4, %v119_v5 }
  0x89   :  { %2987 = vmatmul.mubr.msk.f32.vlgmr.msra.gmra.mrb[0].mxu0 %vm128_vm5, %v121_v8 }
  0x8a   :  { %3087 = vmatpush3.bf16.msra.mxu0 %v3377_v11  ;;  %2993 = vmatprep.mubr.msk.f32.mxu0 %vm72_vm1, %v3409_v27  ;;  %v48_v11 = vld [vmem:[#allocation2 + $0x30] sm:$0xff] }
  0x8b   :  { %3088 = vmatprep.subr.bf16.mxu0 %v3312_v0  ;;  %v3457_v12 = vpack.c.bf16 %v48_v11, %v46_v10 }
  0x8d   :  { %2994 = vmatmul.mubr.msk.f32.vlgmr.msra.gmra.mrb[2].mxu0 %vm72_vm1, %v3414_v28  ;;  %3112 = vmatpush1.bf16.msra.mxu1 %v3457_v12 }
  0x8e   :  { %3090 = vmatpush3.bf16.msra.mxu0 %v3089_v9  ;;  %2996 = vmatprep.mubr.msk.f32.mxu0 %vm72_vm1, %v3419_v29 }
  0x8f   :  { %3095 = vmatprep.subr.bf16.mxu0 %v3382_v18  ;;  %3117 = vmatprep.subr.bf16.mxu1 %v3382_v18 }
  0x91   :  { %2997 = vmatmul.mubr.msk.f32.gmra.mrb[4].mxu0 %vm72_vm1, %v3428_v32 }
  0x92   :  { %3003 = vmatprep.mubr.msk.f32.mxu0 %vm3313_vm0, %v3314_v1 }
  0x95   :  { %3004 = vmatmul.mubr.msk.f32.vlgmr.msra.gmra.mrb[6].mxu0 %vm72_vm1, %v3373_v2 }
  0x96   :  { %3097 = vmatpush1.bf16.msra.mxu0 %v3385_v23  ;;  %575 = vmatprep.mubr.f32.mxu0 %v3314_v1 }
  0x97   :  { %3099 = vmatprep.subr.bf16.mxu0 %v3389_v24 }
  0x9a   :  { %3101 = vmatpush1.bf16.msra.mxu0 %v3457_v12 }
  0x9b   :  { %3102 = vmatprep.subr.bf16.mxu0 %v3312_v0 }
  0xef   :  { %v3463_v13 = vpop.f32.mrb[0].mxu1 }
  0xf0   :  { %v3012_v2 = vpop.f32.mrb[1].mxu1 }
  0xf3   :  { %v3465_v14 = vpop.f32.mrb[2].mxu1 }
  0xf4   :  { %v3015_v15 = vpop.f32.mrb[3].mxu1 }
  0xf7   :  { %v3467_v16 = vpop.f32.mrb[4].mxu1 }
  0xf8   :  { %v3018_v17 = vpop.f32.mrb[5].mxu1 }
 0x15c   :  { %v198_v20 = vpop.f32.mrb[0].mxu0 }
 0x15d   :  { %v3472_v21 = vadd.f32 %v2892_v19, %v198_v20  ;;  %v2988_v22 = vpop.f32.mrb[1].mxu0  ;;  %v666_v19 = vand.u32 127, %v596_v37 }
 0x15f   :  { %2906 = vmatmul.mubr.msk.f32.vlgmr.msra.gmra.mrb[8].mxu0 %vm128_vm5, %v3472_v21  ;;  %v3529_v22 = vsub.s32 %v666_v19, %v3480_v39 }
 0x160   :  { %v2995_v25 = vpop.f32.mrb[2].mxu0  ;;  %3023 = vmatprep.mubr.msk.f32.mxu0 %vm3313_vm0, %v3314_v1 }
 0x161   :  { %v280_v26 = vpop.f32.mrb[3].mxu0  ;;  %v3502_v52 = vadd.f32 %v2995_v25, %v2898_v45 }
 0x162   :  { %v3498_v48 = vadd.f32 %v2898_v45, %v280_v26 }
 0x164   :  { %v2998_v30 = vpop.f32.mrb[4].mxu0 }
 0x165   :  { %v290_v31 = vpop.f32.mrb[5].mxu0  ;;  %v3509_v58 = vadd.f32 %v2998_v30, %v2898_v45 }
 0x166   :  { %v3504_v53 = vadd.f32 %v2898_v45, %v290_v31 }
 0x168   :  { %v3478_v33 = vpop.f32.mrb[6].mxu0 }
 0x169   :  { %v3005_v34 = vpop.f32.mrb[7].mxu0 }
 0x16a   :  { %v3536_v34 = vld [vmem:[%s4174_s0 + $0x18] sm:$0xf] }
 0x16b   :  { %vm502_vm6 = vcmp.gt.f32.partialorder %v3536_v34, 0.5 }
 0x232   :  { %v3485_v41 = vpop.f32.mrb[8].mxu0 }
 0x233   :  { %v599_v42 = vrot.slane %v3485_v41, %v3483_v40  ;;  %v3492_v44 = vpop.f32.mrb[9].mxu0 }
 0x235   :  { %v600_v46 = vcombine.high %v599_v42, %v599_v42  ;;  %v607_v47 = vrot.slane %v599_v42, %v3483_v40 }
 0x237   :  { %v614_v49 = vrot.slane %v600_v46, %v3483_v40  ;;  %v615_v50 = vcombine.high %v607_v47, %v607_v47  ;;  %v620_v51 = vrot.slane %v607_v47, %v3490_v43 }
 0x239   :  { %v637_v54 = vadd.f32 %v620_v51, %v3498_v48  ;;  %v624_v55 = vrot.slane %v614_v49, %v3490_v43  ;;  %v628_v56 = vrot.slane %v615_v50, %v3490_v43  ;;  %v616_v57 = vcombine.high %v614_v49, %v614_v49 }
 0x23b   :  { %v641_v60 = vmax.f32 %v637_v54, 0.0  ;;  %v638_v61 = vadd.f32 %v624_v55, %v3502_v52  ;;  %v639_v62 = vadd.f32 %v628_v56, %v3504_v53  ;;  %v632_v63 = vrot.slane %v616_v57, %v3490_v43 }
 0x23c   :  { %v504_v57 = vsel %vm503_vm7, %v3536_v34, 0.0 }
 0x23d   :  { %v645_v3 = vmul.f32 %v3514_v59, %v641_v60  ;;  %v642_v4 = vmax.f32 %v638_v61, 0.0  ;;  %v643_v5 = vmax.f32 %v639_v62, 0.0  ;;  %v640_v6 = vadd.f32 %v632_v63, %v3509_v58 }
 0x23f   :  { %v649_v7 = vsel %vm128_vm5, %v645_v3, 0.0  ;;  %v646_v8 = vmul.f32 %v3514_v59, %v642_v4  ;;  %v647_v10 = vmul.f32 %v3514_v59, %v643_v5  ;;  %v644_v11 = vmax.f32 %v640_v6, 0.0 }
 0x240   :  { %650 = vadd.xlane.f32.xlu0 %v649_v7  ;;  %v3556_v3 = vsub.s32 1, %v3480_v39 }
 0x241   :  { %v652_v9 = vsel %vm128_vm5, %v646_v8, 0.0  ;;  %v655_v2 = vsel %vm128_vm5, %v647_v10, 0.0  ;;  %v648_v15 = vmul.f32 %v3514_v59, %v644_v11  ;;  %v3567_v8 = vsub.s32 2, %v3480_v39 }
 0x242   :  { %653 = vadd.xlane.f32.xlu1 %v652_v9  ;;  %v3572_v10 = vsub.s32 3, %v3480_v39 }
 0x243   :  { %v658_v17 = vsel %vm128_vm5, %v648_v15, 0.0 }
 0x246   :  { %656 = vadd.xlane.f32.xlu1 %v655_v2  ;;  %v2905_v2 = vld [vmem:[%s4177_s3 + $0x1] ss:$0 sm:$0xff] }
 0x24a   :  { %659 = vadd.xlane.f32.xlu1 %v658_v17 }
 0x2cd   :  { %v651_v25 = vpop.xlane.xlu0 %650 }
 0x2ce   :  { %v670_v35 = vrot.slane %v651_v25, %v3529_v22 }
 0x2cf   :  { %v654_v20 = vpop.xlane.xlu1 %653 }
 0x2d0   :  { %v674_v30 = vrot.slane %v654_v20, %v3529_v22 }
 0x2d2   :  { %v683_v37 = vsel %vm110_vm2, %v674_v30, %v670_v35 }
 0x2d3   :  { %v657_v26 = vpop.xlane.xlu1 %656 }
 0x2d4   :  { %v678_v31 = vrot.slane %v657_v26, %v3529_v22 }
 0x2d6   :  { %v684_v42 = vsel %vm112_vm3, %v678_v31, %v683_v37 }
 0x2d7   :  { %v660_v36 = vpop.xlane.xlu1 %659 }
 0x2d8   :  { %v682_v38 = vrot.slane %v660_v36, %v3529_v22 }
 0x2da   :  { %v685_v45 = vsel %vm114_vm4, %v682_v38, %v684_v42 }
 0x2db   :  { %v687_v46 = vsel %vm502_vm6, %v685_v45, -1e+30 }
 0x2dc   :  { %v688_v47 = vsel %vm503_vm7, %v687_v46, -inf }
 0x2dd   :  { %689 = vmax.xlane.f32.xlu1 %v688_v47 }
 0x36a   :  { %v690_v49 = vpop.xlane.xlu1 %689 }
 0x36b   :  { %v691_v50 = vsub.f32 %v687_v46, %v690_v49 }
 0x36d   :  { %v692_v51 = vmul.f32 1.442695, %v691_v50 }
 0x36f   :  { %3181 = vpow2.f32 %v692_v51 }
 0x379   :  { %v3182_v54 = vpop.eup %3181 }
 0x37a   :  { %v694_v55 = vsel %vm502_vm6, %v3182_v54, 0.0 }
 0x37b   :  { %v695_v56 = vsel %vm503_vm7, %v694_v55, 0.0 }
 0x37c   :  { %696 = vadd.xlane.f32.xlu1 %v695_v56 }
 0x380   :  { %505 = vadd.xlane.f32.xlu1 %v504_v57 }
 0x409   :  { %v697_v60 = vpop.xlane.xlu1 %696 }
 0x40a   :  { %v698_v61 = vmax.f32 %v697_v60, 1e-30 }
 0x40c   :  { %3183 = vrcp.f32 %v698_v61 }
 0x40d   :  { %v3552_v62 = vpop.xlane.xlu1 %505 }
 0x40e   :  { %vm507_vm8 = vcmp.gt.f32.partialorder %v3552_v62, 0.5 }
 0x416   :  { %v3184_v63 = vpop.eup %3183 }
 0x417   :  { %v700_v4 = vmul.f32 %v3184_v63, %v694_v55 }
 0x419   :  { %v3560_v5 = vsel %vm507_vm8, %v700_v4, 0.0 }
 0x41a   :  { %v714_v6 = vrot.slane %v3560_v5, %v3556_v3  ;;  %v707_v7 = vrot.slane %v3560_v5, %v3490_v43  ;;  %v721_v9 = vrot.slane %v3560_v5, %v3567_v8  ;;  %v728_v11 = vrot.slane %v3560_v5, %v3572_v10 }
 0x41c   :  { %716 = vbcast.lane.b32.xlu0 %v714_v6, 256  ;;  %709 = vbcast.lane.b32.xlu1 %v707_v7, 256 }
 0x420   :  { %723 = vbcast.lane.b32.xlu1 %v721_v9, 256 }
 0x424   :  { %730 = vbcast.lane.b32.xlu1 %v728_v11, 256 }
 0x428   :  { %582 = vrot.lane.b32.xlu1 %v2905_v2, %s3316_s7 }
 0x48e   :  { %v717_v15 = vpop.permute.xlu0 %716  ;;  %v710_v17 = vpop.permute.xlu1 %709 }
 0x48f   :  { %v733_v19 = vmul.f32 %v717_v15, %v3414_v28  ;;  %v732_v20 = vmul.f32 %v710_v17, %v3409_v27  ;;  %v60_v15 = vld [vmem:[#allocation2 + $0xe0] sm:$0xff]  ;;  %v61_v17 = vld [vmem:[#allocation2 + $0xf0] sm:$0xff] }
 0x491   :  { %v743_v39 = vsel %vm72_vm1, %v733_v19, 0.0  ;;  %v736_v25 = vsel %vm72_vm1, %v732_v20, 0.0  ;;  %v3588_v20 = vpack.c.bf16 %v61_v17, %v60_v15 }
 0x492   :  { %v744_v26 = vrot.slane %v743_v39, 4  ;;  %v737_v30 = vrot.slane %v736_v25, 4  ;;  %v724_v31 = vpop.permute.xlu1 %723 }
 0x493   :  { %v734_v35 = vmul.f32 %v724_v31, %v3419_v29  ;;  %3104 = vmatpush3.bf16.msra.mxu0 %v3588_v20 }
 0x494   :  { %v745_v36 = vadd.f32 %v744_v26, %v743_v39  ;;  %v738_v37 = vadd.f32 %v737_v30, %v736_v25  ;;  %3113 = vmatprep.subr.bf16.mxu0 %v3312_v0 }
 0x495   :  { %v750_v38 = vsel %vm72_vm1, %v734_v35, 0.0 }
 0x496   :  { %v746_v42 = vrot.slane %v745_v36, 2  ;;  %v739_v45 = vrot.slane %v738_v37, 2  ;;  %v751_v46 = vrot.slane %v750_v38, 4  ;;  %v731_v47 = vpop.permute.xlu1 %730 }
 0x497   :  { %v735_v49 = vmul.f32 %v731_v47, %v3428_v32 }
 0x498   :  { %v747_v50 = vadd.f32 %v746_v42, %v745_v36  ;;  %v740_v51 = vadd.f32 %v739_v45, %v738_v37  ;;  %v752_v54 = vadd.f32 %v751_v46, %v750_v38 }
 0x499   :  { %v757_v55 = vsel %vm72_vm1, %v735_v49, 0.0 }
 0x49a   :  { %v753_v56 = vrot.slane %v752_v54, 2  ;;  %v758_v57 = vrot.slane %v757_v55, 4  ;;  %v748_v60 = vrot.slane %v747_v50, 1  ;;  %v741_v61 = vrot.slane %v740_v51, 1  ;;  %v3598_v35 = vpop.permute.xlu1 %582 }
 0x49b   :  { %v585_v36 = vadd.f32 %v3598_v35, %v3485_v41 }
 0x49c   :  { %v754_v63 = vadd.f32 %v753_v56, %v752_v54  ;;  %v759_v4 = vadd.f32 %v758_v57, %v757_v55  ;;  %v749_v9 = vadd.f32 %v748_v60, %v747_v50  ;;  %v742_v11 = vadd.f32 %v741_v61, %v740_v51 }
 0x49d   :  { %v2907_v37 = vmul.f32 -1.442695, %v585_v36 }
 0x49e   :  { %v755_v6 = vrot.slane %v754_v63, 1  ;;  %v760_v7 = vrot.slane %v759_v4, 2  ;;  %v768_v26 = vsel %vm110_vm2, %v749_v9, %v742_v11 }
 0x49f   :  { %3185 = vpow2.f32 %v2907_v37 }
 0x4a0   :  { %v761_v2 = vadd.f32 %v760_v7, %v759_v4  ;;  %v756_v19 = vadd.f32 %v755_v6, %v754_v63 }
 0x4a2   :  { %v762_v39 = vrot.slane %v761_v2, 1  ;;  %v769_v30 = vsel %vm112_vm3, %v756_v19, %v768_v26 }
 0x4a4   :  { %v763_v25 = vadd.f32 %v762_v39, %v761_v2 }
 0x4a6   :  { %v770_v31 = vsel %vm114_vm4, %v763_v25, %v769_v30 }
 0x4a7   :  { %771 = vrot.lane.b32.xlu1 %v770_v31, %s3316_s7 }
 0x4a9   :  { %v3186_v38 = vpop.eup %3185 }
 0x4aa   :  { %v589_v42 = vadd.f32 1.0, %v3186_v38 }
 0x4ab   :  { %779 = vrot.lane.b32.xlu1 %v3485_v41, %s3317_s8  ;;  %v2899_v41 = vld [vmem:[%s4177_s3 + $0x2] ss:$0 sm:$0xff] }
 0x4ac   :  { %3187 = vrcp.f32 %v589_v42  ;;  %v3614_v50 = vadd.f32 %v2899_v41, %v3478_v33 }
 0x4ae   :  { %v485_v56 = vadd.f32 %v3463_v13, %v3614_v50 }
 0x4b6   :  { %v3188_v45 = vpop.eup %3187 }
 0x519   :  { %v772_v46 = vpop.permute.xlu1 %771 }
 0x51a   :  { %v774_v47 = vmul.f32 %v3188_v45, %v772_v46 }
 0x51c   :  { %776 = vrot.lane.b32.xlu0 %v774_v47, %s3318_s2 }
 0x520   :  { %781 = vrot.lane.b32.xlu0 %v3492_v44, %s3317_s8  ;;  %v780_v44 = vpop.permute.xlu1 %779 }
 0x58e   :  { %v777_v49 = vpop.permute.xlu0 %776 }
 0x58f   :  { %3024 = vmatmul.mubr.msk.f32.vlgmr.msra.gmra.mrb[10].mxu0 %vm72_vm1, %v777_v49 }
 0x590   :  { %3115 = vmatpush3.bf16.msra.mxu0 %v3588_v20  ;;  %3030 = vmatprep.mubr.msk.f32.mxu0 %vm3313_vm0, %v3314_v1 }
 0x591   :  { %3124 = vmatprep.subr.bf16.mxu0 %v3312_v0 }
 0x592   :  { %v782_v51 = vpop.permute.xlu0 %781 }
 0x593   :  { %v784_v54 = vsel %vm783_vm9, %v780_v44, %v782_v51 }
 0x662   :  { %v854_v55 = vpop.f32.mrb[10].mxu0 }
 0x663   :  { %v855_v57 = vadd.f32 %v854_v55, %v784_v54  ;;  %v3025_v60 = vpop.f32.mrb[11].mxu0 }
 0x665   :  { %v858_v61 = vadd.f32 %v855_v57, %v485_v56 }
 0x667   :  { %3189 = vtanh.f32 %v858_v61  ;;  %v2909_v4 = vmul.f32 -1.442695, %v858_v61 }
 0x669   :  { %3191 = vpow2.f32 %v2909_v4 }
 0x671   :  { %v3190_v63 = vpop.eup %3189 }
 0x672   :  { %868 = vrot.lane.b32.xlu1 %v3190_v63, %s3319_s11 }
 0x673   :  { %v3192_v33 = vpop.eup %3191 }
 0x674   :  { %v862_v6 = vadd.f32 1.0, %v3192_v33 }
 0x676   :  { %3193 = vrcp.f32 %v862_v6 }
 0x680   :  { %v3194_v7 = vpop.eup %3193 }
 0x681   :  { %v866_v2 = vmul.f32 %v3194_v7, %v3472_v21 }
 0x6e4   :  { %v869_v9 = vpop.permute.xlu1 %868 }
 0x6e5   :  { %v871_v11 = vmul.f32 %v3194_v7, %v869_v9 }
 0x6e7   :  { %873 = vrot.lane.b32.xlu0 %v871_v11, %s3316_s7 }
 0x759   :  { %v874_v15 = vpop.permute.xlu0 %873 }
 0x75a   :  { %v3622_v17 = vadd.f32 %v874_v15, %v866_v2 }
 0x75c   :  { %3195 = vtanh.f32 %v3622_v17 }
 0x766   :  { %v3196_v19 = vpop.eup %3195 }
 0x767   :  { %879 = vrot.lane.b32.xlu1 %v3196_v19, %s3319_s11 }
 0x7d9   :  { %v880_v39 = vpop.permute.xlu1 %879 }
 0x7da   :  { %v3626_v25 = vmul.f32 %v3194_v7, %v880_v39 }
 0x7dc   :  { %884 = vrot.lane.b32.xlu0 %v3626_v25, %s3316_s7 }
 0x84e   :  { %v885_v26 = vpop.permute.xlu0 %884 }
 0x84f   :  { %2910 = vmatmul.mubr.msk.f32.vlgmr.msra.gmra.mrb[6].mxu1 %vm128_vm5, %v885_v26 }
 0x850   :  { %3119 = vmatpush1.bf16.msra.mxu1 %v3385_v23  ;;  %1321 = vmatprep.mubr.f32.mxu1 %v3314_v1 }
 0x851   :  { %3121 = vmatprep.subr.bf16.mxu1 %v3389_v24 }
 0x854   :  { %3123 = vmatpush1.bf16.msra.mxu1 %v3457_v12 }
 0x855   :  { %3135 = vmatprep.subr.bf16.mxu1 %v3312_v0 }
 0x922   :  { %v3636_v21 = vpop.f32.mrb[6].mxu1 }
 0x923   :  { %v973_v30 = vrot.slane %v3636_v21, %v3483_v40  ;;  %v3640_v31 = vpop.f32.mrb[7].mxu1 }
 0x925   :  { %v974_v36 = vcombine.high %v973_v30, %v973_v30  ;;  %v981_v37 = vrot.slane %v973_v30, %v3483_v40 }
 0x927   :  { %v988_v38 = vrot.slane %v974_v36, %v3483_v40  ;;  %v989_v42 = vcombine.high %v981_v37, %v981_v37  ;;  %v994_v45 = vrot.slane %v981_v37, %v3490_v43 }
 0x929   :  { %v1011_v46 = vadd.f32 %v994_v45, %v3498_v48  ;;  %v998_v47 = vrot.slane %v988_v38, %v3490_v43  ;;  %v990_v49 = vcombine.high %v988_v38, %v988_v38  ;;  %v1002_v41 = vrot.slane %v989_v42, %v3490_v43 }
 0x92b   :  { %v1015_v51 = vmax.f32 %v1011_v46, 0.0  ;;  %v1012_v44 = vadd.f32 %v998_v47, %v3502_v52  ;;  %v1006_v54 = vrot.slane %v990_v49, %v3490_v43  ;;  %v1013_v55 = vadd.f32 %v1002_v41, %v3504_v53 }
 0x92d   :  { %v1019_v56 = vmul.f32 %v3514_v59, %v1015_v51  ;;  %v1016_v57 = vmax.f32 %v1012_v44, 0.0  ;;  %v1014_v60 = vadd.f32 %v1006_v54, %v3509_v58  ;;  %v1017_v61 = vmax.f32 %v1013_v55, 0.0 }
 0x92f   :  { %v1023_v63 = vsel %vm128_vm5, %v1019_v56, 0.0  ;;  %v1020_v4 = vmul.f32 %v3514_v59, %v1016_v57  ;;  %v1018_v33 = vmax.f32 %v1014_v60, 0.0  ;;  %v1021_v9 = vmul.f32 %v3514_v59, %v1017_v61 }
 0x930   :  { %1024 = vadd.xlane.f32.xlu1 %v1023_v63 }
 0x931   :  { %v1026_v6 = vsel %vm128_vm5, %v1020_v4, 0.0  ;;  %v1022_v7 = vmul.f32 %v3514_v59, %v1018_v33  ;;  %v1029_v2 = vsel %vm128_vm5, %v1021_v9, 0.0 }
 0x932   :  { %1027 = vadd.xlane.f32.xlu0 %v1026_v6 }
 0x933   :  { %v1032_v11 = vsel %vm128_vm5, %v1022_v7, 0.0 }
 0x934   :  { %1033 = vadd.xlane.f32.xlu1 %v1032_v11 }
 0x936   :  { %1030 = vadd.xlane.f32.xlu0 %v1029_v2 }
 0x9bd   :  { %v1025_v15 = vpop.xlane.xlu1 %1024 }
 0x9be   :  { %v1042_v30 = vrot.slane %v1025_v15, %v3529_v22 }
 0x9bf   :  { %v1028_v19 = vpop.xlane.xlu0 %1027 }
 0x9c0   :  { %v1046_v39 = vrot.slane %v1028_v19, %v3529_v22 }
 0x9c1   :  { %v1034_v26 = vpop.xlane.xlu1 %1033 }
 0x9c2   :  { %v1055_v38 = vsel %vm110_vm2, %v1046_v39, %v1042_v30  ;;  %v1054_v42 = vrot.slane %v1034_v26, %v3529_v22 }
 0x9c3   :  { %v1031_v36 = vpop.xlane.xlu0 %1030 }
 0x9c4   :  { %v1050_v37 = vrot.slane %v1031_v36, %v3529_v22 }
 0x9c6   :  { %v1056_v45 = vsel %vm112_vm3, %v1050_v37, %v1055_v38 }
 0x9c7   :  { %v1057_v46 = vsel %vm114_vm4, %v1054_v42, %v1056_v45 }
 0x9c8   :  { %v1059_v47 = vsel %vm502_vm6, %v1057_v46, -1e+30 }
 0x9c9   :  { %v1060_v49 = vsel %vm503_vm7, %v1059_v47, -inf }
 0x9ca   :  { %1061 = vmax.xlane.f32.xlu0 %v1060_v49 }
 0xa57   :  { %v1062_v41 = vpop.xlane.xlu0 %1061 }
 0xa58   :  { %v1063_v51 = vsub.f32 %v1059_v47, %v1062_v41 }
 0xa5a   :  { %v1064_v44 = vmul.f32 1.442695, %v1063_v51 }
 0xa5c   :  { %3197 = vpow2.f32 %v1064_v44 }
 0xa66   :  { %v3198_v54 = vpop.eup %3197 }
 0xa67   :  { %v1066_v55 = vsel %vm502_vm6, %v3198_v54, 0.0 }
 0xa68   :  { %v1067_v56 = vsel %vm503_vm7, %v1066_v55, 0.0 }
 0xa69   :  { %1068 = vadd.xlane.f32.xlu1 %v1067_v56 }
 0xaf6   :  { %v1069_v57 = vpop.xlane.xlu1 %1068 }
 0xaf7   :  { %v1070_v60 = vmax.f32 %v1069_v57, 1e-30 }
 0xaf9   :  { %3199 = vrcp.f32 %v1070_v60 }
 0xb03   :  { %v3200_v61 = vpop.eup %3199 }
 0xb04   :  { %v1072_v63 = vmul.f32 %v3200_v61, %v1066_v55 }
 0xb06   :  { %v3675_v4 = vsel %vm507_vm8, %v1072_v63, 0.0 }
 0xb07   :  { %v1084_v33 = vrot.slane %v3675_v4, %v3556_v3  ;;  %v1077_v6 = vrot.slane %v3675_v4, %v3490_v43  ;;  %v1091_v7 = vrot.slane %v3675_v4, %v3567_v8  ;;  %v1098_v9 = vrot.slane %v3675_v4, %v3572_v10 }
 0xb09   :  { %1086 = vbcast.lane.b32.xlu1 %v1084_v33, 256  ;;  %1079 = vbcast.lane.b32.xlu0 %v1077_v6, 256 }
 0xb0d   :  { %1093 = vbcast.lane.b32.xlu1 %v1091_v7, 256  ;;  %1100 = vbcast.lane.b32.xlu0 %v1098_v9, 256 }
 0xb7b   :  { %v1087_v11 = vpop.permute.xlu1 %1086  ;;  %v1080_v2 = vpop.permute.xlu0 %1079 }
 0xb7c   :  { %v1103_v15 = vmul.f32 %v1087_v11, %v3414_v28  ;;  %v1102_v19 = vmul.f32 %v1080_v2, %v3409_v27 }
 0xb7e   :  { %v1113_v39 = vsel %vm72_vm1, %v1103_v15, 0.0  ;;  %v1106_v26 = vsel %vm72_vm1, %v1102_v19, 0.0 }
 0xb7f   :  { %v1114_v30 = vrot.slane %v1113_v39, 4  ;;  %v1107_v36 = vrot.slane %v1106_v26, 4  ;;  %v1094_v37 = vpop.permute.xlu1 %1093  ;;  %v1101_v38 = vpop.permute.xlu0 %1100 }
 0xb80   :  { %v1104_v42 = vmul.f32 %v1094_v37, %v3419_v29  ;;  %v1105_v45 = vmul.f32 %v1101_v38, %v3428_v32 }
 0xb81   :  { %v1115_v46 = vadd.f32 %v1114_v30, %v1113_v39  ;;  %v1108_v47 = vadd.f32 %v1107_v36, %v1106_v26  ;;  %v959_v30 = vadd.f32 %v3636_v21, %v3598_v35 }
 0xb82   :  { %v1120_v49 = vsel %vm72_vm1, %v1104_v42, 0.0  ;;  %v1127_v28 = vsel %vm72_vm1, %v1105_v45, 0.0 }
 0xb83   :  { %v1116_v41 = vrot.slane %v1115_v46, 2  ;;  %v1109_v27 = vrot.slane %v1108_v47, 2  ;;  %v1121_v51 = vrot.slane %v1120_v49, 4  ;;  %v1128_v44 = vrot.slane %v1127_v28, 4 }
 0xb84   :  { %v2911_v36 = vmul.f32 -1.442695, %v959_v30 }
 0xb85   :  { %v1117_v54 = vadd.f32 %v1116_v41, %v1115_v46  ;;  %v1110_v55 = vadd.f32 %v1109_v27, %v1108_v47  ;;  %v1122_v56 = vadd.f32 %v1121_v51, %v1120_v49  ;;  %v1129_v57 = vadd.f32 %v1128_v44, %v1127_v28 }
 0xb86   :  { %3201 = vpow2.f32 %v2911_v36 }
 0xb87   :  { %v1118_v60 = vrot.slane %v1117_v54, 1  ;;  %v1111_v61 = vrot.slane %v1110_v55, 1  ;;  %v1123_v63 = vrot.slane %v1122_v56, 2  ;;  %v1130_v29 = vrot.slane %v1129_v57, 2 }
 0xb89   :  { %v1124_v33 = vadd.f32 %v1123_v63, %v1122_v56  ;;  %v1131_v32 = vadd.f32 %v1130_v29, %v1129_v57  ;;  %v1119_v6 = vadd.f32 %v1118_v60, %v1117_v54  ;;  %v1112_v7 = vadd.f32 %v1111_v61, %v1110_v55 }
 0xb8b   :  { %v1125_v9 = vrot.slane %v1124_v33, 1  ;;  %v1132_v11 = vrot.slane %v1131_v32, 1  ;;  %v1138_v19 = vsel %vm110_vm2, %v1119_v6, %v1112_v7 }
 0xb8d   :  { %v1126_v2 = vadd.f32 %v1125_v9, %v1124_v33  ;;  %v1133_v15 = vadd.f32 %v1132_v11, %v1131_v32 }
 0xb8f   :  { %v1139_v39 = vsel %vm112_vm3, %v1126_v2, %v1138_v19 }
 0xb90   :  { %v1140_v26 = vsel %vm114_vm4, %v1133_v15, %v1139_v39  ;;  %v3202_v37 = vpop.eup %3201 }
 0xb91   :  { %1141 = vrot.lane.b32.xlu1 %v1140_v26, %s3316_s7  ;;  %v963_v38 = vadd.f32 1.0, %v3202_v37 }
 0xb93   :  { %3203 = vrcp.f32 %v963_v38 }
 0xb95   :  { %1149 = vrot.lane.b32.xlu1 %v3636_v21, %s3317_s8  ;;  %v479_v21 = vcombine.high %v3463_v13, %v3463_v13 }
 0xb9d   :  { %v3204_v42 = vpop.eup %3203 }
 0xc03   :  { %v1142_v45 = vpop.permute.xlu1 %1141 }
 0xc04   :  { %v1144_v46 = vmul.f32 %v3204_v42, %v1142_v45 }
 0xc06   :  { %1146 = vrot.lane.b32.xlu0 %v1144_v46, %s3318_s2 }
 0xc07   :  { %v1150_v28 = vpop.permute.xlu1 %1149 }
 0xc0a   :  { %1151 = vrot.lane.b32.xlu0 %v3640_v31, %s3317_s8  ;;  %v486_v31 = vadd.f32 %v479_v21, %v3614_v50 }
 0xc78   :  { %v1147_v47 = vpop.permute.xlu0 %1146 }
 0xc79   :  { %3031 = vmatmul.mubr.msk.f32.vlgmr.msra.gmra.mrb[12].mxu0 %vm72_vm1, %v1147_v47 }
 0xc7a   :  { %3126 = vmatpush3.bf16.msra.mxu0 %v3588_v20  ;;  %3037 = vmatprep.mubr.msk.f32.mxu0 %vm3313_vm0, %v3314_v1 }
 0xc7b   :  { %3128 = vmatprep.subr.bf16.mxu0 %v3382_v18 }
 0xc7c   :  { %v1152_v49 = vpop.permute.xlu0 %1151 }
 0xc7d   :  { %v1153_v41 = vsel %vm783_vm9, %v1150_v28, %v1152_v49 }
 0xd4c   :  { %v1223_v27 = vpop.f32.mrb[12].mxu0 }
 0xd4d   :  { %v1224_v51 = vadd.f32 %v1223_v27, %v1153_v41  ;;  %v3032_v44 = vpop.f32.mrb[13].mxu0 }
 0xd4f   :  { %v1227_v54 = vadd.f32 %v1224_v51, %v486_v31 }
 0xd51   :  { %3205 = vtanh.f32 %v1227_v54  ;;  %v2913_v56 = vmul.f32 -1.442695, %v1227_v54 }
 0xd53   :  { %3207 = vpow2.f32 %v2913_v56 }
 0xd5b   :  { %v3206_v55 = vpop.eup %3205 }
 0xd5c   :  { %1237 = vrot.lane.b32.xlu1 %v3206_v55, %s3319_s11 }
 0xd5d   :  { %v3208_v57 = vpop.eup %3207 }
 0xd5e   :  { %v1231_v60 = vadd.f32 1.0, %v3208_v57 }
 0xd60   :  { %3209 = vrcp.f32 %v1231_v60 }
 0xd6a   :  { %v3210_v13 = vpop.eup %3209 }
 0xd6b   :  { %v1235_v29 = vmul.f32 %v3210_v13, %v3622_v17 }
 0xdce   :  { %v1238_v61 = vpop.permute.xlu1 %1237 }
 0xdcf   :  { %v1240_v63 = vmul.f32 %v3210_v13, %v1238_v61 }
 0xdd1   :  { %1242 = vrot.lane.b32.xlu0 %v1240_v63, %s3316_s7 }
 0xe43   :  { %v1243_v33 = vpop.permute.xlu0 %1242 }
 0xe44   :  { %v3716_v32 = vadd.f32 %v1243_v33, %v1235_v29 }
 0xe46   :  { %3211 = vtanh.f32 %v3716_v32 }
 0xe50   :  { %v3212_v6 = vpop.eup %3211 }
 0xe51   :  { %1248 = vrot.lane.b32.xlu1 %v3212_v6, %s3319_s11 }
 0xec3   :  { %v1249_v7 = vpop.permute.xlu1 %1248 }
 0xec4   :  { %v3720_v9 = vmul.f32 %v3210_v13, %v1249_v7 }
 0xec6   :  { %1253 = vrot.lane.b32.xlu0 %v3720_v9, %s3316_s7 }
 0xf38   :  { %v1254_v11 = vpop.permute.xlu0 %1253 }
 0xf39   :  { %2914 = vmatmul.mubr.msk.f32.vlgmr.msra.gmra.mrb[8].mxu1 %vm128_vm5, %v1254_v11 }
 0xf3a   :  { %3137 = vmatpush3.bf16.msra.mxu1 %v3588_v20  ;;  %3044 = vmatprep.mubr.msk.f32.mxu1 %vm3313_vm0, %v3314_v1 }
 0xf3b   :  { %3139 = vmatprep.subr.bf16.mxu1 %v3382_v18 }
0x100c   :  { %v3729_v17 = vpop.f32.mrb[8].mxu1 }
0x100d   :  { %v1342_v2 = vrot.slane %v3729_v17, %v3483_v40  ;;  %v3733_v15 = vpop.f32.mrb[9].mxu1 }
0x100f   :  { %v1343_v19 = vcombine.high %v1342_v2, %v1342_v2  ;;  %v1350_v39 = vrot.slane %v1342_v2, %v3483_v40 }
0x1011   :  { %v1357_v26 = vrot.slane %v1343_v19, %v3483_v40  ;;  %v1358_v30 = vcombine.high %v1350_v39, %v1350_v39  ;;  %v1363_v36 = vrot.slane %v1350_v39, %v3490_v43 }
0x1013   :  { %v1380_v37 = vadd.f32 %v1363_v36, %v3498_v48  ;;  %v1367_v38 = vrot.slane %v1357_v26, %v3490_v43  ;;  %v1359_v42 = vcombine.high %v1357_v26, %v1357_v26  ;;  %v1371_v45 = vrot.slane %v1358_v30, %v3490_v43 }
0x1015   :  { %v1384_v46 = vmax.f32 %v1380_v37, 0.0  ;;  %v1381_v47 = vadd.f32 %v1367_v38, %v3502_v52  ;;  %v1375_v21 = vrot.slane %v1359_v42, %v3490_v43  ;;  %v1382_v49 = vadd.f32 %v1371_v45, %v3504_v53 }
0x1017   :  { %v1388_v28 = vmul.f32 %v3514_v59, %v1384_v46  ;;  %v1385_v41 = vmax.f32 %v1381_v47, 0.0  ;;  %v1383_v27 = vadd.f32 %v1375_v21, %v3509_v58  ;;  %v1386_v31 = vmax.f32 %v1382_v49, 0.0 }
0x1019   :  { %v1392_v51 = vsel %vm128_vm5, %v1388_v28, 0.0  ;;  %v1389_v44 = vmul.f32 %v3514_v59, %v1385_v41  ;;  %v1387_v54 = vmax.f32 %v1383_v27, 0.0  ;;  %v1390_v57 = vmul.f32 %v3514_v59, %v1386_v31 }
0x101a   :  { %1393 = vadd.xlane.f32.xlu1 %v1392_v51 }
0x101b   :  { %v1395_v55 = vsel %vm128_vm5, %v1389_v44, 0.0  ;;  %v1391_v56 = vmul.f32 %v3514_v59, %v1387_v54  ;;  %v1398_v13 = vsel %vm128_vm5, %v1390_v57, 0.0 }
0x101c   :  { %1396 = vadd.xlane.f32.xlu0 %v1395_v55 }
0x101d   :  { %v1401_v60 = vsel %vm128_vm5, %v1391_v56, 0.0  ;;  %v3781_v56 = vld [vmem:[%s4175_s1 + $0x8] sm:$0xff] }
0x101e   :  { %1402 = vadd.xlane.f32.xlu1 %v1401_v60  ;;  %v3787_v60 = vld [vmem:[%s4175_s1] sm:$0xff] }
0x1020   :  { %1399 = vadd.xlane.f32.xlu0 %v1398_v13 }
0x10a7   :  { %v1394_v61 = vpop.xlane.xlu1 %1393 }
0x10a8   :  { %v1411_v6 = vrot.slane %v1394_v61, %v3529_v22 }
0x10a9   :  { %v1397_v63 = vpop.xlane.xlu0 %1396 }
0x10aa   :  { %v1415_v29 = vrot.slane %v1397_v63, %v3529_v22 }
0x10ab   :  { %v1403_v33 = vpop.xlane.xlu1 %1402 }
0x10ac   :  { %v1424_v2 = vsel %vm110_vm2, %v1415_v29, %v1411_v6  ;;  %v1423_v59 = vrot.slane %v1403_v33, %v3529_v22 }
0x10ad   :  { %v1400_v7 = vpop.xlane.xlu0 %1399 }
0x10ae   :  { %v1419_v11 = vrot.slane %v1400_v7, %v3529_v22 }
0x10b0   :  { %v1425_v19 = vsel %vm112_vm3, %v1419_v11, %v1424_v2  ;;  %v3795_v11 = vld [vmem:[%s4175_s1 + $0x10] sm:$0xff] }
0x10b1   :  { %v1426_v39 = vsel %vm114_vm4, %v1423_v59, %v1425_v19  ;;  %v3801_v59 = vld [vmem:[%s4175_s1 + $0x18] sm:$0xff] }
0x10b2   :  { %v1428_v26 = vsel %vm502_vm6, %v1426_v39, -1e+30 }
0x10b3   :  { %v1429_v30 = vsel %vm503_vm7, %v1428_v26, -inf }
0x10b4   :  { %1430 = vmax.xlane.f32.xlu0 %v1429_v30 }
0x1141   :  { %v1431_v36 = vpop.xlane.xlu0 %1430 }
0x1142   :  { %v1432_v37 = vsub.f32 %v1428_v26, %v1431_v36 }
0x1144   :  { %v1433_v38 = vmul.f32 1.442695, %v1432_v37 }
0x1146   :  { %3213 = vpow2.f32 %v1433_v38 }
0x1150   :  { %v3214_v42 = vpop.eup %3213 }
0x1151   :  { %v1435_v45 = vsel %vm502_vm6, %v3214_v42, 0.0 }
0x1152   :  { %v1436_v46 = vsel %vm503_vm7, %v1435_v45, 0.0 }
0x1153   :  { %1437 = vadd.xlane.f32.xlu1 %v1436_v46 }
0x11e0   :  { %v1438_v47 = vpop.xlane.xlu1 %1437 }
0x11e1   :  { %v1439_v21 = vmax.f32 %v1438_v47, 1e-30 }
0x11e3   :  { %3215 = vrcp.f32 %v1439_v21 }
0x11ed   :  { %v3216_v49 = vpop.eup %3215 }
0x11ee   :  { %v1441_v28 = vmul.f32 %v3216_v49, %v1435_v45 }
0x11f0   :  { %v3768_v41 = vsel %vm507_vm8, %v1441_v28, 0.0 }
0x11f1   :  { %v1453_v27 = vrot.slane %v3768_v41, %v3556_v3  ;;  %v1446_v31 = vrot.slane %v3768_v41, %v3490_v43  ;;  %v1460_v51 = vrot.slane %v3768_v41, %v3567_v8  ;;  %v1467_v44 = vrot.slane %v3768_v41, %v3572_v10 }
0x11f3   :  { %1455 = vbcast.lane.b32.xlu1 %v1453_v27, 256  ;;  %1448 = vbcast.lane.b32.xlu0 %v1446_v31, 256 }
0x11f7   :  { %1462 = vbcast.lane.b32.xlu1 %v1460_v51, 256  ;;  %1469 = vbcast.lane.b32.xlu0 %v1467_v44, 256 }
0x1265   :  { %v1456_v54 = vpop.permute.xlu1 %1455  ;;  %v1449_v55 = vpop.permute.xlu0 %1448 }
0x1266   :  { %v1472_v57 = vmul.f32 %v3781_v56, %v1456_v54  ;;  %v1471_v13 = vmul.f32 %v3787_v60, %v1449_v55 }
0x1268   :  { %v1482_v61 = vsel %vm72_vm1, %v1472_v57, 0.0  ;;  %v1475_v63 = vsel %vm72_vm1, %v1471_v13, 0.0 }
0x1269   :  { %v1483_v29 = vrot.slane %v1482_v61, 4  ;;  %v1476_v33 = vrot.slane %v1475_v63, 4  ;;  %v1463_v6 = vpop.permute.xlu1 %1462  ;;  %v1470_v7 = vpop.permute.xlu0 %1469 }
0x126a   :  { %v1473_v2 = vmul.f32 %v3795_v11, %v1463_v6  ;;  %v1474_v19 = vmul.f32 %v3801_v59, %v1470_v7 }
0x126b   :  { %v1484_v39 = vadd.f32 %v1483_v29, %v1482_v61  ;;  %v1477_v26 = vadd.f32 %v1476_v33, %v1475_v63 }
0x126c   :  { %v1489_v30 = vsel %vm72_vm1, %v1473_v2, 0.0  ;;  %v1496_v36 = vsel %vm72_vm1, %v1474_v19, 0.0  ;;  %v1328_v2 = vadd.f32 %v3729_v17, %v3598_v35 }
0x126d   :  { %v1485_v37 = vrot.slane %v1484_v39, 2  ;;  %v1478_v38 = vrot.slane %v1477_v26, 2  ;;  %v1490_v42 = vrot.slane %v1489_v30, 4  ;;  %v1497_v45 = vrot.slane %v1496_v36, 4 }
0x126e   :  { %v2915_v19 = vmul.f32 -1.442695, %v1328_v2 }
0x126f   :  { %v1486_v46 = vadd.f32 %v1485_v37, %v1484_v39  ;;  %v1479_v47 = vadd.f32 %v1478_v38, %v1477_v26  ;;  %v1491_v21 = vadd.f32 %v1490_v42, %v1489_v30  ;;  %v1498_v49 = vadd.f32 %v1497_v45, %v1496_v36 }
0x1270   :  { %3217 = vpow2.f32 %v2915_v19 }
0x1271   :  { %v1487_v28 = vrot.slane %v1486_v46, 1  ;;  %v1480_v27 = vrot.slane %v1479_v47, 1  ;;  %v1492_v31 = vrot.slane %v1491_v21, 2  ;;  %v1499_v51 = vrot.slane %v1498_v49, 2 }
0x1273   :  { %v1493_v44 = vadd.f32 %v1492_v31, %v1491_v21  ;;  %v1500_v54 = vadd.f32 %v1499_v51, %v1498_v49  ;;  %v1488_v55 = vadd.f32 %v1487_v28, %v1486_v46  ;;  %v1481_v57 = vadd.f32 %v1480_v27, %v1479_v47 }
0x1275   :  { %v1494_v13 = vrot.slane %v1493_v44, 1  ;;  %v1501_v61 = vrot.slane %v1500_v54, 1  ;;  %v1507_v33 = vsel %vm110_vm2, %v1488_v55, %v1481_v57 }
0x1277   :  { %v1495_v63 = vadd.f32 %v1494_v13, %v1493_v44  ;;  %v1502_v29 = vadd.f32 %v1501_v61, %v1500_v54 }
0x1279   :  { %v1508_v6 = vsel %vm112_vm3, %v1495_v63, %v1507_v33 }
0x127a   :  { %v1509_v7 = vsel %vm114_vm4, %v1502_v29, %v1508_v6  ;;  %v3218_v39 = vpop.eup %3217 }
0x127b   :  { %1510 = vrot.lane.b32.xlu1 %v1509_v7, %s3316_s7  ;;  %v1332_v26 = vadd.f32 1.0, %v3218_v39 }
0x127d   :  { %3219 = vrcp.f32 %v1332_v26 }
0x127f   :  { %1518 = vrot.lane.b32.xlu1 %v3729_v17, %s3317_s8 }
0x1287   :  { %v3220_v30 = vpop.eup %3219 }
0x12ed   :  { %v1511_v36 = vpop.permute.xlu1 %1510 }
0x12ee   :  { %v1513_v37 = vmul.f32 %v3220_v30, %v1511_v36 }
0x12f0   :  { %1515 = vrot.lane.b32.xlu0 %v1513_v37, %s3318_s2 }
0x12f1   :  { %v1519_v42 = vpop.permute.xlu1 %1518 }
0x12f4   :  { %1520 = vrot.lane.b32.xlu0 %v3733_v15, %s3317_s8  ;;  %v487_v15 = vadd.f32 %v3465_v14, %v3614_v50 }
0x1362   :  { %v1516_v38 = vpop.permute.xlu0 %1515 }
0x1363   :  { %3038 = vmatmul.mubr.msk.f32.vlgmr.msra.gmra.mrb[14].mxu0 %vm72_vm1, %v1516_v38 }
0x1364   :  { %3130 = vmatpush1.bf16.msra.mxu0 %v3385_v23  ;;  %1690 = vmatprep.mubr.f32.mxu0 %v3314_v1 }
0x1365   :  { %3132 = vmatprep.subr.bf16.mxu0 %v3389_v24 }
0x1366   :  { %v1521_v17 = vpop.permute.xlu0 %1520 }
0x1367   :  { %v1522_v45 = vsel %vm783_vm9, %v1519_v42, %v1521_v17 }
0x1368   :  { %3134 = vmatpush1.bf16.msra.mxu0 %v3457_v12 }
0x1369   :  { %3146 = vmatprep.subr.bf16.mxu0 %v3312_v0 }
0x1436   :  { %v1592_v46 = vpop.f32.mrb[14].mxu0 }
0x1437   :  { %v1593_v47 = vadd.f32 %v1592_v46, %v1522_v45  ;;  %v3039_v21 = vpop.f32.mrb[15].mxu0 }
0x1439   :  { %v1596_v49 = vadd.f32 %v1593_v47, %v487_v15  ;;  %v3860_v47 = vld [vmem:[%s4177_s3 + $0x5] ss:$0 sm:$0xff] }
0x143b   :  { %3221 = vtanh.f32 %v1596_v49  ;;  %v2917_v27 = vmul.f32 -1.442695, %v1596_v49 }
0x143d   :  { %3223 = vpow2.f32 %v2917_v27 }
0x1445   :  { %v3222_v28 = vpop.eup %3221 }
0x1446   :  { %1606 = vrot.lane.b32.xlu1 %v3222_v28, %s3319_s11 }
0x1447   :  { %v3224_v31 = vpop.eup %3223 }
0x1448   :  { %v1600_v51 = vadd.f32 1.0, %v3224_v31 }
0x144a   :  { %3225 = vrcp.f32 %v1600_v51 }
0x1454   :  { %v3226_v44 = vpop.eup %3225 }
0x1455   :  { %v1604_v57 = vmul.f32 %v3226_v44, %v3716_v32 }
0x14b8   :  { %v1607_v54 = vpop.permute.xlu1 %1606 }
0x14b9   :  { %v1609_v55 = vmul.f32 %v3226_v44, %v1607_v54 }
0x14bb   :  { %1611 = vrot.lane.b32.xlu0 %v1609_v55, %s3316_s7 }
0x152d   :  { %v1612_v13 = vpop.permute.xlu0 %1611 }
0x152e   :  { %v3829_v61 = vadd.f32 %v1612_v13, %v1604_v57 }
0x1530   :  { %3227 = vtanh.f32 %v3829_v61 }
0x153a   :  { %v3228_v63 = vpop.eup %3227 }
0x153b   :  { %1617 = vrot.lane.b32.xlu1 %v3228_v63, %s3319_s11 }
0x15ad   :  { %v1618_v29 = vpop.permute.xlu1 %1617 }
0x15ae   :  { %v3833_v33 = vmul.f32 %v3226_v44, %v1618_v29 }
0x15b0   :  { %1622 = vrot.lane.b32.xlu0 %v3833_v33, %s3316_s7 }
0x1622   :  { %v1623_v6 = vpop.permute.xlu0 %1622 }
0x1623   :  { %2918 = vmatmul.mubr.msk.f32.vlgmr.msra.gmra.mrb[16].mxu0 %vm128_vm5, %v1623_v6 }
0x1624   :  { %3148 = vmatpush3.bf16.msra.mxu0 %v3588_v20  ;;  %3051 = vmatprep.mubr.msk.f32.mxu0 %vm3313_vm0, %v3314_v1 }
0x1625   :  { %3150 = vmatprep.subr.bf16.mxu0 %v3382_v18 }
0x16f6   :  { %v3842_v32 = vpop.f32.mrb[16].mxu0 }
0x16f7   :  { %v1711_v7 = vrot.slane %v3842_v32, %v3483_v40  ;;  %v3846_v2 = vpop.f32.mrb[17].mxu0 }
0x16f9   :  { %v1712_v19 = vcombine.high %v1711_v7, %v1711_v7  ;;  %v1719_v39 = vrot.slane %v1711_v7, %v3483_v40 }
0x16fb   :  { %v1726_v26 = vrot.slane %v1712_v19, %v3483_v40  ;;  %v1727_v30 = vcombine.high %v1719_v39, %v1719_v39  ;;  %v1732_v36 = vrot.slane %v1719_v39, %v3490_v43 }
0x16fd   :  { %v1749_v37 = vadd.f32 %v1732_v36, %v3498_v48  ;;  %v1736_v38 = vrot.slane %v1726_v26, %v3490_v43  ;;  %v1728_v18 = vcombine.high %v1726_v26, %v1726_v26  ;;  %v1740_v17 = vrot.slane %v1727_v30, %v3490_v43 }
0x16ff   :  { %v1753_v42 = vmax.f32 %v1749_v37, 0.0  ;;  %v1750_v45 = vadd.f32 %v1736_v38, %v3502_v52  ;;  %v1744_v46 = vrot.slane %v1728_v18, %v3490_v43  ;;  %v1751_v15 = vadd.f32 %v1740_v17, %v3504_v53 }
0x1701   :  { %v1757_v21 = vmul.f32 %v3860_v47, %v1753_v42  ;;  %v1754_v49 = vmax.f32 %v1750_v45, 0.0  ;;  %v1752_v28 = vadd.f32 %v1744_v46, %v3509_v58  ;;  %v1755_v27 = vmax.f32 %v1751_v15, 0.0 }
0x1703   :  { %v1761_v31 = vsel %vm128_vm5, %v1757_v21, 0.0  ;;  %v1758_v51 = vmul.f32 %v3860_v47, %v1754_v49  ;;  %v1756_v44 = vmax.f32 %v1752_v28, 0.0  ;;  %v1759_v57 = vmul.f32 %v3860_v47, %v1755_v27 }
0x1704   :  { %1762 = vadd.xlane.f32.xlu1 %v1761_v31 }
0x1705   :  { %v1764_v54 = vsel %vm128_vm5, %v1758_v51, 0.0  ;;  %v1760_v55 = vmul.f32 %v3860_v47, %v1756_v44  ;;  %v1767_v63 = vsel %vm128_vm5, %v1759_v57, 0.0 }
0x1706   :  { %1765 = vadd.xlane.f32.xlu0 %v1764_v54 }
0x1707   :  { %v1770_v13 = vsel %vm128_vm5, %v1760_v55, 0.0 }
0x1708   :  { %1771 = vadd.xlane.f32.xlu1 %v1770_v13 }
0x170a   :  { %1768 = vadd.xlane.f32.xlu0 %v1767_v63 }
0x1791   :  { %v1763_v29 = vpop.xlane.xlu1 %1762 }
0x1792   :  { %v1780_v39 = vrot.slane %v1763_v29, %v3529_v22 }
0x1793   :  { %v1766_v6 = vpop.xlane.xlu0 %1765 }
0x1794   :  { %v1784_v7 = vrot.slane %v1766_v6, %v3529_v22 }
0x1795   :  { %v1772_v19 = vpop.xlane.xlu1 %1771 }
0x1796   :  { %v1793_v36 = vsel %vm110_vm2, %v1784_v7, %v1780_v39  ;;  %v1792_v37 = vrot.slane %v1772_v19, %v3529_v22 }
0x1797   :  { %v1769_v26 = vpop.xlane.xlu0 %1768 }
0x1798   :  { %v1788_v30 = vrot.slane %v1769_v26, %v3529_v22 }
0x179a   :  { %v1794_v38 = vsel %vm112_vm3, %v1788_v30, %v1793_v36 }
0x179b   :  { %v1795_v18 = vsel %vm114_vm4, %v1792_v37, %v1794_v38 }
0x179c   :  { %v1797_v17 = vsel %vm502_vm6, %v1795_v18, -1e+30 }
0x179d   :  { %v1798_v42 = vsel %vm503_vm7, %v1797_v17, -inf }
0x179e   :  { %1799 = vmax.xlane.f32.xlu0 %v1798_v42 }
0x182b   :  { %v1800_v45 = vpop.xlane.xlu0 %1799 }
0x182c   :  { %v1801_v46 = vsub.f32 %v1797_v17, %v1800_v45 }
0x182e   :  { %v1802_v15 = vmul.f32 1.442695, %v1801_v46 }
0x1830   :  { %3229 = vpow2.f32 %v1802_v15 }
0x183a   :  { %v3230_v21 = vpop.eup %3229 }
0x183b   :  { %v1804_v49 = vsel %vm502_vm6, %v3230_v21, 0.0 }
0x183c   :  { %v1805_v28 = vsel %vm503_vm7, %v1804_v49, 0.0 }
0x183d   :  { %1806 = vadd.xlane.f32.xlu1 %v1805_v28 }
0x18ca   :  { %v1807_v27 = vpop.xlane.xlu1 %1806 }
0x18cb   :  { %v1808_v31 = vmax.f32 %v1807_v27, 1e-30 }
0x18cd   :  { %3231 = vrcp.f32 %v1808_v31 }
0x18d7   :  { %v3232_v51 = vpop.eup %3231 }
0x18d8   :  { %v1810_v44 = vmul.f32 %v3232_v51, %v1804_v49 }
0x18da   :  { %v3886_v54 = vsel %vm507_vm8, %v1810_v44, 0.0 }
0x18db   :  { %v1822_v55 = vrot.slane %v3886_v54, %v3556_v3  ;;  %v1815_v57 = vrot.slane %v3886_v54, %v3490_v43  ;;  %v1829_v13 = vrot.slane %v3886_v54, %v3567_v8  ;;  %v1836_v63 = vrot.slane %v3886_v54, %v3572_v10 }
0x18dd   :  { %1824 = vbcast.lane.b32.xlu1 %v1822_v55, 256  ;;  %1817 = vbcast.lane.b32.xlu0 %v1815_v57, 256 }
0x18e1   :  { %1831 = vbcast.lane.b32.xlu1 %v1829_v13, 256  ;;  %1838 = vbcast.lane.b32.xlu0 %v1836_v63, 256 }
0x194f   :  { %v1825_v29 = vpop.permute.xlu1 %1824  ;;  %v1818_v6 = vpop.permute.xlu0 %1817 }
0x1950   :  { %v1841_v7 = vmul.f32 %v3781_v56, %v1825_v29  ;;  %v1840_v19 = vmul.f32 %v3787_v60, %v1818_v6 }
0x1952   :  { %v1851_v39 = vsel %vm72_vm1, %v1841_v7, 0.0  ;;  %v1844_v26 = vsel %vm72_vm1, %v1840_v19, 0.0 }
0x1953   :  { %v1852_v30 = vrot.slane %v1851_v39, 4  ;;  %v1845_v36 = vrot.slane %v1844_v26, 4  ;;  %v1832_v37 = vpop.permute.xlu1 %1831  ;;  %v1839_v38 = vpop.permute.xlu0 %1838 }
0x1954   :  { %v1842_v18 = vmul.f32 %v3795_v11, %v1832_v37  ;;  %v1843_v17 = vmul.f32 %v3801_v59, %v1839_v38 }
0x1955   :  { %v1853_v42 = vadd.f32 %v1852_v30, %v1851_v39  ;;  %v1846_v45 = vadd.f32 %v1845_v36, %v1844_v26 }
0x1956   :  { %v1858_v46 = vsel %vm72_vm1, %v1842_v18, 0.0  ;;  %v1865_v15 = vsel %vm72_vm1, %v1843_v17, 0.0 }
0x1957   :  { %v1854_v21 = vrot.slane %v1853_v42, 2  ;;  %v1847_v49 = vrot.slane %v1846_v45, 2  ;;  %v1859_v28 = vrot.slane %v1858_v46, 4  ;;  %v1866_v27 = vrot.slane %v1865_v15, 4 }
0x1959   :  { %v1855_v31 = vadd.f32 %v1854_v21, %v1853_v42  ;;  %v1848_v51 = vadd.f32 %v1847_v49, %v1846_v45  ;;  %v1860_v44 = vadd.f32 %v1859_v28, %v1858_v46  ;;  %v1867_v55 = vadd.f32 %v1866_v27, %v1865_v15 }
0x195a   :  { %v1697_v42 = vadd.f32 %v3842_v32, %v3598_v35 }
0x195b   :  { %v1856_v57 = vrot.slane %v1855_v31, 1  ;;  %v1849_v13 = vrot.slane %v1848_v51, 1  ;;  %v1861_v63 = vrot.slane %v1860_v44, 2  ;;  %v1868_v29 = vrot.slane %v1867_v55, 2 }
0x195c   :  { %v2919_v45 = vmul.f32 -1.442695, %v1697_v42 }
0x195d   :  { %v1862_v6 = vadd.f32 %v1861_v63, %v1860_v44  ;;  %v1869_v7 = vadd.f32 %v1868_v29, %v1867_v55  ;;  %v1857_v19 = vadd.f32 %v1856_v57, %v1855_v31  ;;  %v1850_v39 = vadd.f32 %v1849_v13, %v1848_v51 }
0x195e   :  { %3233 = vpow2.f32 %v2919_v45 }
0x195f   :  { %v1863_v26 = vrot.slane %v1862_v6, 1  ;;  %v1870_v30 = vrot.slane %v1869_v7, 1  ;;  %v1876_v38 = vsel %vm110_vm2, %v1857_v19, %v1850_v39 }
0x1961   :  { %v1864_v36 = vadd.f32 %v1863_v26, %v1862_v6  ;;  %v1871_v37 = vadd.f32 %v1870_v30, %v1869_v7 }
0x1963   :  { %v1877_v18 = vsel %vm112_vm3, %v1864_v36, %v1876_v38 }
0x1964   :  { %v1878_v17 = vsel %vm114_vm4, %v1871_v37, %v1877_v18 }
0x1965   :  { %1879 = vrot.lane.b32.xlu1 %v1878_v17, %s3316_s7 }
0x1968   :  { %v3234_v46 = vpop.eup %3233 }
0x1969   :  { %1887 = vrot.lane.b32.xlu1 %v3842_v32, %s3317_s8  ;;  %v1701_v15 = vadd.f32 1.0, %v3234_v46  ;;  %v480_v32 = vcombine.high %v3465_v14, %v3465_v14 }
0x196b   :  { %3235 = vrcp.f32 %v1701_v15  ;;  %v488_v55 = vadd.f32 %v480_v32, %v3614_v50 }
0x1975   :  { %v3236_v21 = vpop.eup %3235 }
0x19d7   :  { %v1880_v49 = vpop.permute.xlu1 %1879 }
0x19d8   :  { %v1882_v28 = vmul.f32 %v3236_v21, %v1880_v49 }
0x19da   :  { %1884 = vrot.lane.b32.xlu0 %v1882_v28, %s3318_s2 }
0x19db   :  { %v1888_v51 = vpop.permute.xlu1 %1887 }
0x19de   :  { %1889 = vrot.lane.b32.xlu0 %v3846_v2, %s3317_s8 }
0x1a4c   :  { %v1885_v27 = vpop.permute.xlu0 %1884 }
0x1a4d   :  { %3045 = vmatmul.mubr.msk.f32.vlgmr.msra.gmra.mrb[10].mxu1 %vm72_vm1, %v1885_v27 }
0x1a4e   :  { %3141 = vmatpush1.bf16.msra.mxu1 %v3385_v23  ;;  %2059 = vmatprep.mubr.f32.mxu1 %v3314_v1 }
0x1a4f   :  { %3143 = vmatprep.subr.bf16.mxu1 %v3389_v24 }
0x1a50   :  { %v1890_v31 = vpop.permute.xlu0 %1889 }
0x1a51   :  { %v1891_v2 = vsel %vm783_vm9, %v1888_v51, %v1890_v31 }
0x1a52   :  { %3145 = vmatpush1.bf16.msra.mxu1 %v3457_v12 }
0x1a53   :  { %3157 = vmatprep.subr.bf16.mxu1 %v3312_v0 }
0x1b20   :  { %v1961_v44 = vpop.f32.mrb[10].mxu1 }
0x1b21   :  { %v1962_v57 = vadd.f32 %v1961_v44, %v1891_v2  ;;  %v3046_v13 = vpop.f32.mrb[11].mxu1 }
0x1b23   :  { %v1965_v63 = vadd.f32 %v1962_v57, %v488_v55 }
0x1b25   :  { %3237 = vtanh.f32 %v1965_v63  ;;  %v2921_v6 = vmul.f32 -1.442695, %v1965_v63 }
0x1b27   :  { %3239 = vpow2.f32 %v2921_v6 }
0x1b2f   :  { %v3238_v29 = vpop.eup %3237 }
0x1b30   :  { %1975 = vrot.lane.b32.xlu1 %v3238_v29, %s3319_s11 }
0x1b31   :  { %v3240_v7 = vpop.eup %3239 }
0x1b32   :  { %v1969_v19 = vadd.f32 1.0, %v3240_v7 }
0x1b34   :  { %3241 = vrcp.f32 %v1969_v19 }
0x1b3e   :  { %v3242_v14 = vpop.eup %3241 }
0x1b3f   :  { %v1973_v30 = vmul.f32 %v3242_v14, %v3829_v61 }
0x1ba2   :  { %v1976_v39 = vpop.permute.xlu1 %1975 }
0x1ba3   :  { %v1978_v26 = vmul.f32 %v3242_v14, %v1976_v39 }
0x1ba5   :  { %1980 = vrot.lane.b32.xlu0 %v1978_v26, %s3316_s7 }
0x1c17   :  { %v1981_v36 = vpop.permute.xlu0 %1980 }
0x1c18   :  { %v3928_v37 = vadd.f32 %v1981_v36, %v1973_v30 }
0x1c1a   :  { %3243 = vtanh.f32 %v3928_v37 }
0x1c24   :  { %v3244_v38 = vpop.eup %3243 }
0x1c25   :  { %1986 = vrot.lane.b32.xlu1 %v3244_v38, %s3319_s11 }
0x1c97   :  { %v1987_v18 = vpop.permute.xlu1 %1986 }
0x1c98   :  { %v3932_v17 = vmul.f32 %v3242_v14, %v1987_v18 }
0x1c9a   :  { %1991 = vrot.lane.b32.xlu0 %v3932_v17, %s3316_s7 }
0x1d0c   :  { %v1992_v42 = vpop.permute.xlu0 %1991 }
0x1d0d   :  { %2922 = vmatmul.mubr.msk.f32.vlgmr.msra.gmra.mrb[12].mxu1 %vm128_vm5, %v1992_v42 }
0x1d0e   :  { %3159 = vmatpush3.bf16.msra.mxu1 %v3588_v20  ;;  %3058 = vmatprep.mubr.msk.f32.mxu1 %vm3313_vm0, %v3314_v1 }
0x1d0f   :  { %3160 = vmatprep.subr.bf16.mxu1 %v3312_v0 }
0x1de0   :  { %v3941_v61 = vpop.f32.mrb[12].mxu1 }
0x1de1   :  { %v2080_v45 = vrot.slane %v3941_v61, %v3483_v40  ;;  %v3945_v46 = vpop.f32.mrb[13].mxu1 }
0x1de3   :  { %v2081_v15 = vcombine.high %v2080_v45, %v2080_v45  ;;  %v2088_v21 = vrot.slane %v2080_v45, %v3483_v40 }
0x1de5   :  { %v2095_v49 = vrot.slane %v2081_v15, %v3483_v40  ;;  %v2096_v28 = vcombine.high %v2088_v21, %v2088_v21  ;;  %v2101_v20 = vrot.slane %v2088_v21, %v3490_v43 }
0x1de7   :  { %v2118_v27 = vadd.f32 %v2101_v20, %v3498_v48  ;;  %v2105_v32 = vrot.slane %v2095_v49, %v3490_v43  ;;  %v2097_v31 = vcombine.high %v2095_v49, %v2095_v49  ;;  %v2109_v51 = vrot.slane %v2096_v28, %v3490_v43 }
0x1de9   :  { %v2122_v2 = vmax.f32 %v2118_v27, 0.0  ;;  %v2119_v44 = vadd.f32 %v2105_v32, %v3502_v52  ;;  %v2113_v55 = vrot.slane %v2097_v31, %v3490_v43  ;;  %v2120_v57 = vadd.f32 %v2109_v51, %v3504_v53 }
0x1deb   :  { %v2126_v13 = vmul.f32 %v3860_v47, %v2122_v2  ;;  %v2123_v63 = vmax.f32 %v2119_v44, 0.0  ;;  %v2121_v29 = vadd.f32 %v2113_v55, %v3509_v58  ;;  %v2124_v6 = vmax.f32 %v2120_v57, 0.0 }
0x1ded   :  { %v2130_v7 = vsel %vm128_vm5, %v2126_v13, 0.0  ;;  %v2127_v19 = vmul.f32 %v3860_v47, %v2123_v63  ;;  %v2125_v14 = vmax.f32 %v2121_v29, 0.0  ;;  %v2128_v30 = vmul.f32 %v3860_v47, %v2124_v6 }
0x1dee   :  { %2131 = vadd.xlane.f32.xlu1 %v2130_v7 }
0x1def   :  { %v2133_v39 = vsel %vm128_vm5, %v2127_v19, 0.0  ;;  %v2129_v26 = vmul.f32 %v3860_v47, %v2125_v14  ;;  %v2136_v38 = vsel %vm128_vm5, %v2128_v30, 0.0 }
0x1df0   :  { %2134 = vadd.xlane.f32.xlu0 %v2133_v39 }
0x1df1   :  { %v2139_v36 = vsel %vm128_vm5, %v2129_v26, 0.0 }
0x1df2   :  { %2140 = vadd.xlane.f32.xlu1 %v2139_v36 }
0x1df4   :  { %2137 = vadd.xlane.f32.xlu0 %v2136_v38 }
0x1e7b   :  { %v2132_v18 = vpop.xlane.xlu1 %2131 }
0x1e7c   :  { %v2149_v21 = vrot.slane %v2132_v18, %v3529_v22 }
0x1e7d   :  { %v2135_v42 = vpop.xlane.xlu0 %2134 }
0x1e7e   :  { %v2153_v45 = vrot.slane %v2135_v42, %v3529_v22 }
0x1e7f   :  { %v2141_v15 = vpop.xlane.xlu1 %2140 }
0x1e80   :  { %v2162_v20 = vsel %vm110_vm2, %v2153_v45, %v2149_v21  ;;  %v2161_v27 = vrot.slane %v2141_v15, %v3529_v22 }
0x1e81   :  { %v2138_v49 = vpop.xlane.xlu0 %2137 }
0x1e82   :  { %v2157_v28 = vrot.slane %v2138_v49, %v3529_v22 }
0x1e84   :  { %v2163_v32 = vsel %vm112_vm3, %v2157_v28, %v2162_v20 }
0x1e85   :  { %v2164_v31 = vsel %vm114_vm4, %v2161_v27, %v2163_v32 }
0x1e86   :  { %v2166_v51 = vsel %vm502_vm6, %v2164_v31, -1e+30 }
0x1e87   :  { %v2167_v2 = vsel %vm503_vm7, %v2166_v51, -inf }
0x1e88   :  { %2168 = vmax.xlane.f32.xlu0 %v2167_v2 }
0x1f15   :  { %v2169_v44 = vpop.xlane.xlu0 %2168 }
0x1f16   :  { %v2170_v55 = vsub.f32 %v2166_v51, %v2169_v44 }
0x1f18   :  { %v2171_v57 = vmul.f32 1.442695, %v2170_v55 }
0x1f1a   :  { %3245 = vpow2.f32 %v2171_v57 }
0x1f24   :  { %v3246_v13 = vpop.eup %3245 }
0x1f25   :  { %v2173_v63 = vsel %vm502_vm6, %v3246_v13, 0.0 }
0x1f26   :  { %v2174_v29 = vsel %vm503_vm7, %v2173_v63, 0.0 }
0x1f27   :  { %2175 = vadd.xlane.f32.xlu1 %v2174_v29 }
0x1fb4   :  { %v2176_v6 = vpop.xlane.xlu1 %2175 }
0x1fb5   :  { %v2177_v7 = vmax.f32 %v2176_v6, 1e-30 }
0x1fb7   :  { %3247 = vrcp.f32 %v2177_v7 }
0x1fc1   :  { %v3248_v19 = vpop.eup %3247 }
0x1fc2   :  { %v2179_v14 = vmul.f32 %v3248_v19, %v2173_v63 }
0x1fc4   :  { %v3980_v39 = vsel %vm507_vm8, %v2179_v14, 0.0 }
0x1fc5   :  { %v2191_v26 = vrot.slane %v3980_v39, %v3556_v3  ;;  %v2184_v30 = vrot.slane %v3980_v39, %v3490_v43  ;;  %v2198_v36 = vrot.slane %v3980_v39, %v3567_v8  ;;  %v2205_v38 = vrot.slane %v3980_v39, %v3572_v10 }
0x1fc7   :  { %2193 = vbcast.lane.b32.xlu1 %v2191_v26, 256  ;;  %2186 = vbcast.lane.b32.xlu0 %v2184_v30, 256 }
0x1fcb   :  { %2200 = vbcast.lane.b32.xlu1 %v2198_v36, 256  ;;  %2207 = vbcast.lane.b32.xlu0 %v2205_v38, 256 }
0x2039   :  { %v2194_v18 = vpop.permute.xlu1 %2193  ;;  %v2187_v42 = vpop.permute.xlu0 %2186 }
0x203a   :  { %v2210_v45 = vmul.f32 %v3781_v56, %v2194_v18  ;;  %v2209_v15 = vmul.f32 %v3787_v60, %v2187_v42 }
0x203c   :  { %v2220_v21 = vsel %vm72_vm1, %v2210_v45, 0.0  ;;  %v2213_v49 = vsel %vm72_vm1, %v2209_v15, 0.0 }
0x203d   :  { %v2221_v28 = vrot.slane %v2220_v21, 4  ;;  %v2214_v20 = vrot.slane %v2213_v49, 4  ;;  %v2201_v27 = vpop.permute.xlu1 %2200  ;;  %v2208_v32 = vpop.permute.xlu0 %2207 }
0x203e   :  { %v2211_v31 = vmul.f32 %v3795_v11, %v2201_v27  ;;  %v2212_v51 = vmul.f32 %v3801_v59, %v2208_v32 }
0x203f   :  { %v2222_v2 = vadd.f32 %v2221_v28, %v2220_v21  ;;  %v2215_v44 = vadd.f32 %v2214_v20, %v2213_v49 }
0x2040   :  { %v2227_v55 = vsel %vm72_vm1, %v2211_v31, 0.0  ;;  %v2234_v57 = vsel %vm72_vm1, %v2212_v51, 0.0 }
0x2041   :  { %v2223_v13 = vrot.slane %v2222_v2, 2  ;;  %v2216_v63 = vrot.slane %v2215_v44, 2  ;;  %v2228_v29 = vrot.slane %v2227_v55, 4  ;;  %v2235_v6 = vrot.slane %v2234_v57, 4 }
0x2043   :  { %v2224_v7 = vadd.f32 %v2223_v13, %v2222_v2  ;;  %v2217_v19 = vadd.f32 %v2216_v63, %v2215_v44  ;;  %v2229_v14 = vadd.f32 %v2228_v29, %v2227_v55  ;;  %v2236_v26 = vadd.f32 %v2235_v6, %v2234_v57 }
0x2044   :  { %v2066_v2 = vadd.f32 %v3941_v61, %v3598_v35 }
0x2045   :  { %v2225_v30 = vrot.slane %v2224_v7, 1  ;;  %v2218_v36 = vrot.slane %v2217_v19, 1  ;;  %v2230_v38 = vrot.slane %v2229_v14, 2  ;;  %v2237_v18 = vrot.slane %v2236_v26, 2 }
0x2046   :  { %v2923_v44 = vmul.f32 -1.442695, %v2066_v2 }
0x2047   :  { %v2231_v42 = vadd.f32 %v2230_v38, %v2229_v14  ;;  %v2238_v45 = vadd.f32 %v2237_v18, %v2236_v26  ;;  %v2226_v15 = vadd.f32 %v2225_v30, %v2224_v7  ;;  %v2219_v21 = vadd.f32 %v2218_v36, %v2217_v19 }
0x2048   :  { %3249 = vpow2.f32 %v2923_v44  ;;  %v489_v26 = vadd.f32 %v3467_v16, %v3614_v50 }
0x2049   :  { %v2232_v49 = vrot.slane %v2231_v42, 1  ;;  %v2239_v28 = vrot.slane %v2238_v45, 1  ;;  %v2245_v32 = vsel %vm110_vm2, %v2226_v15, %v2219_v21 }
0x204b   :  { %v2233_v20 = vadd.f32 %v2232_v49, %v2231_v42  ;;  %v2240_v27 = vadd.f32 %v2239_v28, %v2238_v45 }
0x204d   :  { %v2246_v31 = vsel %vm112_vm3, %v2233_v20, %v2245_v32 }
0x204e   :  { %v2247_v51 = vsel %vm114_vm4, %v2240_v27, %v2246_v31 }
0x204f   :  { %2248 = vrot.lane.b32.xlu1 %v2247_v51, %s3316_s7 }
0x2052   :  { %v3250_v55 = vpop.eup %3249 }
0x2053   :  { %2256 = vrot.lane.b32.xlu1 %v3941_v61, %s3317_s8  ;;  %v2070_v57 = vadd.f32 1.0, %v3250_v55 }
0x2055   :  { %3251 = vrcp.f32 %v2070_v57 }
0x205f   :  { %v3252_v13 = vpop.eup %3251 }
0x20c1   :  { %v2249_v63 = vpop.permute.xlu1 %2248 }
0x20c2   :  { %v2251_v29 = vmul.f32 %v3252_v13, %v2249_v63 }
0x20c4   :  { %2253 = vrot.lane.b32.xlu0 %v2251_v29, %s3318_s2 }
0x20c5   :  { %v2257_v7 = vpop.permute.xlu1 %2256 }
0x20c8   :  { %2258 = vrot.lane.b32.xlu0 %v3945_v46, %s3317_s8 }
0x2136   :  { %v2254_v6 = vpop.permute.xlu0 %2253 }
0x2137   :  { %3052 = vmatmul.mubr.msk.f32.vlgmr.msra.gmra.mrb[18].mxu0 %vm72_vm1, %v2254_v6 }
0x2138   :  { %3152 = vmatpush1.bf16.msra.mxu0 %v3385_v23  ;;  %2428 = vmatprep.mubr.f32.mxu0 %v3314_v1 }
0x2139   :  { %3154 = vmatprep.subr.bf16.mxu0 %v3389_v24 }
0x213a   :  { %v2259_v61 = vpop.permute.xlu0 %2258 }
0x213b   :  { %v2260_v19 = vsel %vm783_vm9, %v2257_v7, %v2259_v61 }
0x213c   :  { %3156 = vmatpush1.bf16.msra.mxu0 %v3457_v12 }
0x220a   :  { %v2330_v14 = vpop.f32.mrb[18].mxu0 }
0x220b   :  { %v2331_v46 = vadd.f32 %v2330_v14, %v2260_v19  ;;  %v3053_v30 = vpop.f32.mrb[19].mxu0 }
0x220d   :  { %v2334_v36 = vadd.f32 %v2331_v46, %v489_v26 }
0x220f   :  { %3253 = vtanh.f32 %v2334_v36  ;;  %v2925_v23 = vmul.f32 -1.442695, %v2334_v36 }
0x2211   :  { %3255 = vpow2.f32 %v2925_v23 }
0x2219   :  { %v3254_v38 = vpop.eup %3253 }
0x221a   :  { %2344 = vrot.lane.b32.xlu1 %v3254_v38, %s3319_s11 }
0x221b   :  { %v3256_v24 = vpop.eup %3255 }
0x221c   :  { %v2338_v18 = vadd.f32 1.0, %v3256_v24 }
0x221e   :  { %3257 = vrcp.f32 %v2338_v18 }
0x2228   :  { %v3258_v12 = vpop.eup %3257 }
0x2229   :  { %v2342_v15 = vmul.f32 %v3258_v12, %v3928_v37 }
0x228c   :  { %v2345_v42 = vpop.permute.xlu1 %2344 }
0x228d   :  { %v2347_v45 = vmul.f32 %v3258_v12, %v2345_v42 }
0x228f   :  { %2349 = vrot.lane.b32.xlu0 %v2347_v45, %s3316_s7 }
0x2301   :  { %v2350_v21 = vpop.permute.xlu0 %2349 }
0x2302   :  { %v4020_v49 = vadd.f32 %v2350_v21, %v2342_v15 }
0x2304   :  { %3259 = vtanh.f32 %v4020_v49 }
0x230e   :  { %v3260_v28 = vpop.eup %3259 }
0x230f   :  { %2355 = vrot.lane.b32.xlu1 %v3260_v28, %s3319_s11 }
0x2381   :  { %v2356_v20 = vpop.permute.xlu1 %2355 }
0x2382   :  { %v4024_v27 = vmul.f32 %v3258_v12, %v2356_v20 }
0x2384   :  { %2360 = vrot.lane.b32.xlu0 %v4024_v27, %s3316_s7 }
0x23f6   :  { %v2361_v32 = vpop.permute.xlu0 %2360 }
0x23f7   :  { %2926 = vmatmul.mubr.msk.f32.vlgmr.msra.gmra.mrb[20].mxu0 %vm128_vm5, %v2361_v32 }
0x24ca   :  { %v4029_v31 = vpop.f32.mrb[20].mxu0 }
0x24cb   :  { %v2449_v37 = vrot.slane %v4029_v31, %v3483_v40  ;;  %v4033_v51 = vpop.f32.mrb[21].mxu0 }
0x24cd   :  { %v2450_v2 = vcombine.high %v2449_v37, %v2449_v37  ;;  %v2457_v44 = vrot.slane %v2449_v37, %v3483_v40 }
0x24cf   :  { %v2464_v55 = vrot.slane %v2450_v2, %v3483_v40  ;;  %v2465_v57 = vcombine.high %v2457_v44, %v2457_v44  ;;  %v2470_v13 = vrot.slane %v2457_v44, %v3490_v43 }
0x24d1   :  { %v2466_v63 = vcombine.high %v2464_v55, %v2464_v55  ;;  %v2487_v29 = vadd.f32 %v2470_v13, %v3498_v48  ;;  %v2474_v6 = vrot.slane %v2464_v55, %v3490_v43  ;;  %v2478_v61 = vrot.slane %v2465_v57, %v3490_v43 }
0x24d3   :  { %v2491_v7 = vmax.f32 %v2487_v29, 0.0  ;;  %v2488_v19 = vadd.f32 %v2474_v6, %v3502_v52  ;;  %v2482_v14 = vrot.slane %v2466_v63, %v3490_v43  ;;  %v2489_v26 = vadd.f32 %v2478_v61, %v3504_v53 }
0x24d5   :  { %v2495_v46 = vmul.f32 %v3860_v47, %v2491_v7  ;;  %v2492_v40 = vmax.f32 %v2488_v19, 0.0  ;;  %v2490_v30 = vadd.f32 %v2482_v14, %v3509_v58  ;;  %v2493_v36 = vmax.f32 %v2489_v26, 0.0 }
0x24d7   :  { %v2499_v38 = vsel %vm128_vm5, %v2495_v46, 0.0  ;;  %v2496_v48 = vmul.f32 %v3860_v47, %v2492_v40  ;;  %v2494_v23 = vmax.f32 %v2490_v30, 0.0  ;;  %v2497_v18 = vmul.f32 %v3860_v47, %v2493_v36 }
0x24d8   :  { %2500 = vadd.xlane.f32.xlu1 %v2499_v38 }
0x24d9   :  { %v2502_v24 = vsel %vm128_vm5, %v2496_v48, 0.0  ;;  %v2498_v52 = vmul.f32 %v3860_v47, %v2494_v23  ;;  %v2505_v12 = vsel %vm128_vm5, %v2497_v18, 0.0 }
0x24da   :  { %2503 = vadd.xlane.f32.xlu0 %v2502_v24 }
0x24db   :  { %v2508_v53 = vsel %vm128_vm5, %v2498_v52, 0.0 }
0x24dc   :  { %2509 = vadd.xlane.f32.xlu1 %v2508_v53 }
0x24de   :  { %2506 = vadd.xlane.f32.xlu0 %v2505_v12 }
0x2565   :  { %v2501_v58 = vpop.xlane.xlu1 %2500 }
0x2566   :  { %v2518_v21 = vrot.slane %v2501_v58, %v3529_v22 }
0x2567   :  { %v2504_v42 = vpop.xlane.xlu0 %2503 }
0x2568   :  { %v2522_v45 = vrot.slane %v2504_v42, %v3529_v22 }
0x2569   :  { %v2510_v15 = vpop.xlane.xlu1 %2509 }
0x256a   :  { %v2531_v32 = vsel %vm110_vm2, %v2522_v45, %v2518_v21  ;;  %v2530_v47 = vrot.slane %v2510_v15, %v3529_v22 }
0x256b   :  { %v2507_v28 = vpop.xlane.xlu0 %2506 }
0x256c   :  { %v2526_v20 = vrot.slane %v2507_v28, %v3529_v22 }
0x256e   :  { %v2532_v37 = vsel %vm112_vm3, %v2526_v20, %v2531_v32 }
0x256f   :  { %v2533_v2 = vsel %vm114_vm4, %v2530_v47, %v2532_v37 }
0x2570   :  { %v2535_v44 = vsel %vm502_vm6, %v2533_v2, -1e+30 }
0x2571   :  { %v2536_v55 = vsel %vm503_vm7, %v2535_v44, -inf }
0x2572   :  { %2537 = vmax.xlane.f32.xlu0 %v2536_v55 }
0x25ff   :  { %v2538_v57 = vpop.xlane.xlu0 %2537 }
0x2600   :  { %v2539_v13 = vsub.f32 %v2535_v44, %v2538_v57 }
0x2602   :  { %v2540_v63 = vmul.f32 1.442695, %v2539_v13 }
0x2604   :  { %3261 = vpow2.f32 %v2540_v63 }
0x260e   :  { %v3262_v29 = vpop.eup %3261 }
0x260f   :  { %v2542_v6 = vsel %vm502_vm6, %v3262_v29, 0.0 }
0x2610   :  { %v2543_v22 = vsel %vm503_vm7, %v2542_v6, 0.0 }
0x2611   :  { %2544 = vadd.xlane.f32.xlu1 %v2543_v22 }
0x269e   :  { %v2545_v61 = vpop.xlane.xlu1 %2544 }
0x269f   :  { %v2546_v7 = vmax.f32 %v2545_v61, 1e-30 }
0x26a1   :  { %3263 = vrcp.f32 %v2546_v7 }
0x26ab   :  { %v3264_v19 = vpop.eup %3263 }
0x26ac   :  { %v2548_v14 = vmul.f32 %v3264_v19, %v2542_v6  ;;  %v2435_v19 = vadd.f32 %v4029_v31, %v3598_v35  ;;  %v481_v35 = vcombine.high %v3467_v16, %v3467_v16 }
0x26ae   :  { %v4068_v26 = vsel %vm507_vm8, %v2548_v14, 0.0  ;;  %v2927_v14 = vmul.f32 -1.442695, %v2435_v19 }
0x26af   :  { %v2560_v46 = vrot.slane %v4068_v26, %v3556_v3  ;;  %v2553_v40 = vrot.slane %v4068_v26, %v3490_v43  ;;  %v2567_v34 = vrot.slane %v4068_v26, %v3567_v8  ;;  %v2574_v30 = vrot.slane %v4068_v26, %v3572_v10 }
0x26b0   :  { %3265 = vpow2.f32 %v2927_v14 }
0x26b1   :  { %2562 = vbcast.lane.b32.xlu1 %v2560_v46, 256  ;;  %2555 = vbcast.lane.b32.xlu0 %v2553_v40, 256 }
0x26b5   :  { %2569 = vbcast.lane.b32.xlu1 %v2567_v34, 256  ;;  %2576 = vbcast.lane.b32.xlu0 %v2574_v30, 256 }
0x26ba   :  { %v3266_v46 = vpop.eup %3265 }
0x26bb   :  { %v2439_v40 = vadd.f32 1.0, %v3266_v46 }
0x26bd   :  { %3267 = vrcp.f32 %v2439_v40 }
0x26c7   :  { %v3268_v34 = vpop.eup %3267 }
0x2723   :  { %v2563_v36 = vpop.permute.xlu1 %2562  ;;  %v2556_v62 = vpop.permute.xlu0 %2555 }
0x2724   :  { %v2579_v38 = vmul.f32 %v3781_v56, %v2563_v36  ;;  %v2578_v48 = vmul.f32 %v3787_v60, %v2556_v62 }
0x2726   :  { %v2589_v3 = vsel %vm72_vm1, %v2579_v38, 0.0  ;;  %v2582_v43 = vsel %vm72_vm1, %v2578_v48, 0.0 }
0x2727   :  { %v2590_v23 = vrot.slane %v2589_v3, 4  ;;  %v2583_v24 = vrot.slane %v2582_v43, 4  ;;  %v2570_v52 = vpop.permute.xlu1 %2569  ;;  %v2577_v18 = vpop.permute.xlu0 %2576 }
0x2728   :  { %v2580_v8 = vmul.f32 %v3795_v11, %v2570_v52  ;;  %v2581_v10 = vmul.f32 %v3801_v59, %v2577_v18  ;;  %v63_v18 = vld [vmem:[#allocation2 + $0x110] sm:$0xff] }
0x2729   :  { %v2591_v53 = vadd.f32 %v2590_v23, %v2589_v3  ;;  %v2584_v12 = vadd.f32 %v2583_v24, %v2582_v43  ;;  %v490_v43 = vadd.f32 %v481_v35, %v3614_v50 }
0x272a   :  { %v2596_v58 = vsel %vm72_vm1, %v2580_v8, 0.0  ;;  %v2603_v56 = vsel %vm72_vm1, %v2581_v10, 0.0 }
0x272b   :  { %v2592_v42 = vrot.slane %v2591_v53, 2  ;;  %v2585_v60 = vrot.slane %v2584_v12, 2  ;;  %v2597_v45 = vrot.slane %v2596_v58, 4  ;;  %v2604_v15 = vrot.slane %v2603_v56, 4 }
0x272d   :  { %v2593_v21 = vadd.f32 %v2592_v42, %v2591_v53  ;;  %v2586_v28 = vadd.f32 %v2585_v60, %v2584_v12  ;;  %v2598_v20 = vadd.f32 %v2597_v45, %v2596_v58  ;;  %v2605_v32 = vadd.f32 %v2604_v15, %v2603_v56  ;;  %v64_v58 = vld [vmem:[#allocation2 + $0x120] sm:$0xff]  ;;  %v65_v56 = vld [vmem:[#allocation2 + $0x130] sm:$0xff] }
0x272e   :  { %v3164_v50 = vpack.c.bf16 %v65_v56, %v64_v58  ;;  %v2728_v15 = vrot.slane %v3720_v9, 4 }
0x272f   :  { %v2594_v47 = vrot.slane %v2593_v21, 1  ;;  %v2587_v37 = vrot.slane %v2586_v28, 1  ;;  %v2599_v2 = vrot.slane %v2598_v20, 2  ;;  %v2606_v11 = vrot.slane %v2605_v32, 2 }
0x2731   :  { %v2600_v44 = vadd.f32 %v2599_v2, %v2598_v20  ;;  %v2607_v59 = vadd.f32 %v2606_v11, %v2605_v32  ;;  %v2595_v55 = vadd.f32 %v2594_v47, %v2593_v21  ;;  %v2588_v57 = vadd.f32 %v2587_v37, %v2586_v28 }
0x2732   :  { %v3320_v21 = vmov 16   ;;  %v2730_v37 = vrot.slane %v3932_v17, 4  ;;  %v3321_v2 = vmov 0  }
0x2733   :  { %v2601_v13 = vrot.slane %v2600_v44, 1  ;;  %v2608_v63 = vrot.slane %v2607_v59, 1  ;;  %v2614_v22 = vsel %vm110_vm2, %v2595_v55, %v2588_v57  ;;  %3179 = vset.pattern.permute.xlu1 %v3320_v21  ;;  %3180 = vset.pattern.permute.xlu0 %v3320_v21 }
0x2735   :  { %v2602_v29 = vadd.f32 %v2601_v13, %v2600_v44  ;;  %v2609_v6 = vadd.f32 %v2608_v63, %v2607_v59  ;;  %v3283_v44 = vld [vmem:[%s4174_s0 + $0x10] sm:$0xff] }
0x2736   :  { %vm2854_vm12 = vcmp.gt.f32.partialorder %v3283_v44, 0.5 }
0x2737   :  { %v2615_v61 = vsel %vm112_vm3, %v2602_v29, %v2614_v22  ;;  %v2857_v17 = vsel %vm2854_vm12, 1, %v3321_v2 }
0x2738   :  { %v2616_v7 = vsel %vm114_vm4, %v2609_v6, %v2615_v61  ;;  %v2740_v6 = vrot.slane %v3675_v4, 4 }
0x2739   :  { %2617 = vrot.lane.b32.xlu1 %v2616_v7, %s3316_s7  ;;  %v2746_v7 = vrot.slane %v4068_v26, 4 }
0x273a   :  { %v2748_v61 = vsel %vm2735_vm10, %v3560_v5, %v2740_v6  ;;  %v2930_v5 = vld [vmem:[%s4177_s3 + $0x3] ss:$0 sm:$0xff] }
0x273d   :  { %2625 = vrot.lane.b32.xlu1 %v4029_v31, %s3317_s8 }
0x27ab   :  { %v2618_v30 = vpop.permute.xlu1 %2617 }
0x27ac   :  { %v2620_v36 = vmul.f32 %v3268_v34, %v2618_v30  ;;  %v2743_v34 = vrot.slane %v3886_v54, 4 }
0x27ae   :  { %2622 = vrot.lane.b32.xlu0 %v2620_v36, %s3318_s2  ;;  %v2749_v36 = vsel %vm2735_vm10, %v3768_v41, %v2743_v34 }
0x27af   :  { %v2626_v38 = vpop.permute.xlu1 %2625 }
0x27b2   :  { %2627 = vrot.lane.b32.xlu0 %v4033_v51, %s3317_s8  ;;  %v62_v51 = vld [vmem:[#allocation2 + $0x100] sm:$0xff] }
0x27b3   :  { %v3161_v8 = vpack.c.bf16 %v63_v18, %v62_v51 }
0x2820   :  { %v2623_v62 = vpop.permute.xlu0 %2622 }
0x2821   :  { %3059 = vmatmul.mubr.msk.f32.vlgmr.msra.gmra.mrb[14].mxu1 %vm72_vm1, %v2623_v62 }
0x2822   :  { %3069 = vmatprep.mubr.msk.f32.mxu1 %vm3313_vm0, %v3314_v1  ;;  %3162 = vmatpush3.bf16.msra.mxu1 %v3161_v8 }
0x2823   :  { %3163 = vmatprep.subr.bf16.mxu1 %v3312_v0  ;;  %v2736_v0 = vsel %vm2735_vm10, %v3626_v25, %v2728_v15  ;;  %v3282_v25 = vld [vmem:[%s4174_s0] sm:$0xff] }
0x2824   :  { %v2628_v31 = vpop.permute.xlu0 %2627  ;;  %vm2852_vm11 = vcmp.gt.f32.partialorder %v3282_v25, 0.5 }
0x2825   :  { %v2629_v48 = vsel %vm783_vm9, %v2626_v38, %v2628_v31  ;;  %v2855_v11 = vsel %vm2852_vm11, 1, %v3321_v2 }
0x2826   :  { %3165 = vmatpush3.bf16.msra.mxu1 %v3164_v50 }
0x28f4   :  { %v2699_v3 = vpop.f32.mrb[14].mxu1 }
0x28f5   :  { %v2700_v23 = vadd.f32 %v2699_v3, %v2629_v48  ;;  %v3060_v24 = vpop.f32.mrb[15].mxu1 }
0x28f7   :  { %v2703_v52 = vadd.f32 %v2700_v23, %v490_v43 }
0x28f9   :  { %3269 = vtanh.f32 %v2703_v52  ;;  %v2929_v16 = vmul.f32 -1.442695, %v2703_v52 }
0x28fb   :  { %3271 = vpow2.f32 %v2929_v16 }
0x2903   :  { %v3270_v10 = vpop.eup %3269 }
0x2904   :  { %2713 = vrot.lane.b32.xlu1 %v3270_v10, %s3319_s11 }
0x2905   :  { %v3272_v53 = vpop.eup %3271 }
0x2906   :  { %v2707_v12 = vadd.f32 1.0, %v3272_v53 }
0x2908   :  { %3273 = vrcp.f32 %v2707_v12 }
0x2912   :  { %v3274_v42 = vpop.eup %3273 }
0x2913   :  { %v2711_v28 = vmul.f32 %v3274_v42, %v4020_v49  ;;  %v2737_v49 = vsel %vm2735_vm10, %v3833_v33, %v2730_v37  ;;  %v3284_v33 = vld [vmem:[%s4174_s0 + $0x8] sm:$0xff] }
0x2914   :  { %vm2853_vm13 = vcmp.gt.f32.partialorder %v3284_v33, 0.5 }
0x2915   :  { %v2856_v29 = vsel %vm2853_vm13, 1, %v3321_v2 }
0x2976   :  { %v2714_v60 = vpop.permute.xlu1 %2713 }
0x2977   :  { %v2716_v45 = vmul.f32 %v3274_v42, %v2714_v60 }
0x2979   :  { %2718 = vrot.lane.b32.xlu0 %v2716_v45, %s3316_s7 }
0x297d   :  { %2760 = vrot.lane.b32.xlu0 %v2736_v0, %s3316_s7 }
0x29eb   :  { %v2719_v20 = vpop.permute.xlu0 %2718 }
0x29ec   :  { %v2721_v32 = vadd.f32 %v2719_v20, %v2711_v28 }
0x29ee   :  { %3275 = vtanh.f32 %v2721_v32 }
0x29ef   :  { %v2761_v47 = vpop.permute.xlu0 %2760 }
0x29f0   :  { %3070 = vmatmul.mubr.msk.f32.vlgmr.msra.gmra.mrb[16].mxu1 %vm128_vm5, %v2761_v47 }
0x29f1   :  { %3072 = vmatprep.mubr.msk.f32.mxu1 %vm3313_vm0, %v3314_v1 }
0x29f8   :  { %v3276_v9 = vpop.eup %3275 }
0x29f9   :  { %2724 = vrot.lane.b32.xlu1 %v3276_v9, %s3319_s11 }
0x29fd   :  { %2762 = vrot.lane.b32.xlu1 %v2737_v49, %s3316_s7 }
0x2a01   :  { %2859 = vperm.xlu1 %3179, %v2855_v11  }
0x2a05   :  { %2865 = vperm.xlu1 %3179, %v2857_v17  }
0x2a6b   :  { %v2725_v59 = vpop.permute.xlu1 %2724 }
0x2a6c   :  { %v2727_v55 = vmul.f32 %v3274_v42, %v2725_v59 }
0x2a6e   :  { %v2733_v57 = vrot.slane %v2727_v55, 4 }
0x2a6f   :  { %v2763_v13 = vpop.permute.xlu1 %2762 }
0x2a70   :  { %3073 = vmatmul.mubr.msk.f32.gmra.mrb[18].mxu1 %vm128_vm5, %v2763_v13  ;;  %v2738_v63 = vsel %vm2735_vm10, %v4024_v27, %v2733_v57 }
0x2a71   :  { %2764 = vrot.lane.b32.xlu0 %v2738_v63, %s3316_s7  ;;  %3075 = vmatprep.mubr.msk.f32.mxu1 %vm3313_vm0, %v3314_v1  ;;  %v2750_v1 = vsel %vm2735_vm10, %v3980_v39, %v2746_v7 }
0x2a75   :  { %2862 = vperm.xlu0 %3180, %v2856_v29  }
0x2a80   :  { %v2860_v22 = vpop.permute.xlu1 %2859 }
0x2a81   :  { %vm2867_vm15 = vcmp.eq.s32.totalorder %v2860_v22, 1 }
0x2a82   :  { %v2876_v19 = vsel %vm2867_vm15, %v2748_v61, 0.0 }
0x2a83   :  { %2880 = vst.msk [vmem:[%s4179_s5] sm:$0xff] %vm2879_vm14, %v2876_v19 }
0x2a84   :  { %v2866_v27 = vpop.permute.xlu1 %2865 }
0x2a85   :  { %vm2869_vm0 = vcmp.eq.s32.totalorder %v2866_v27, 1 }
0x2a86   :  { %v2878_v4 = vsel %vm2869_vm0, %v2750_v1, 0.0 }
0x2a87   :  { %2882 = vst.msk [vmem:[%s4179_s5 + $0x10] sm:$0xff] %vm2879_vm14, %v2878_v4 }
0x2ac3   :  { %v2838_v26 = vpop.f32.mrb[16].mxu1 }
0x2ac4   :  { %v2839_v14 = vadd.f32 %v2930_v5, %v2838_v26  ;;  %v3071_v46 = vpop.f32.mrb[17].mxu1 }
0x2ac6   :  { %v2870_v40 = vsel %vm2867_vm15, %v2839_v14, 0.0 }
0x2ac7   :  { %2873 = vst.msk [vmem:[%s4178_s4] sm:$0xff] %vm72_vm1, %v2870_v40 }
0x2ae3   :  { %v2765_v39 = vpop.permute.xlu0 %2764 }
0x2ae4   :  { %3076 = vmatmul.mubr.msk.f32.gmra.mrb[20].mxu1 %vm128_vm5, %v2765_v39 }
0x2af4   :  { %v2863_v30 = vpop.permute.xlu0 %2862 }
0x2af5   :  { %vm2868_vm2 = vcmp.eq.s32.totalorder %v2863_v30, 1 }
0x2af6   :  { %v2877_v62 = vsel %vm2868_vm2, %v2749_v36, 0.0 }
0x2af7   :  { %2881 = vst.msk [vmem:[%s4179_s5 + $0x8] sm:$0xff] %vm2879_vm14, %v2877_v62 }
0x2b43   :  { %v2843_v35 = vpop.f32.mrb[18].mxu1 }
0x2b44   :  { %v2844_v31 = vadd.f32 %v2930_v5, %v2843_v35  ;;  %v3074_v38 = vpop.f32.mrb[19].mxu1 }
0x2b46   :  { %v2871_v48 = vsel %vm2868_vm2, %v2844_v31, 0.0 }
0x2b47   :  { %2874 = vst.msk [vmem:[%s4178_s4 + $0x8] sm:$0xff] %vm72_vm1, %v2871_v48 }
0x2bb7   :  { %v2848_v54 = vpop.f32.mrb[20].mxu1 }
0x2bb8   :  { %v2849_v3 = vadd.f32 %v2930_v5, %v2848_v54  ;;  %v3077_v43 = vpop.f32.mrb[21].mxu1 }
0x2bba   :  { %v2872_v41 = vsel %vm2869_vm0, %v2849_v3, 0.0 }
0x2bbb   :  { %2875 = vst.msk [vmem:[%s4178_s4 + $0x10] sm:$0xff] %vm72_vm1, %v2872_v41 }
0x2bbc   :  { %2891 = vsyncpa [#allocation3], 1 }

</bundles_post_ra>
